<compile_context>
chip_gen: v6e
topology: v6e:2x2x1
jax: 0.10.0
libtpu: 0.0.40
codegen_flags: <defaults>
</compile_context>

<pallas_src>
import jax
import jax.numpy as jnp
from jax.experimental import pallas as pl
from jax.experimental.pallas import tpu as pltpu


def _make_neumf_kernel(n_hidden: int):
    """Fused kernel: MLP tower + GMF branch + final affine + sigmoid."""

    def kernel(u_mlp_ref, i_mlp_ref, u_mf_ref, i_mf_ref, *refs):
        out_ref = refs[-1]                       # (1, batch_tile) f32
        params = refs[:-1]                       # [w0,b0, ..., w_out, b_out] all f32, resident

        # Streamed activations arrive in bf16; upcast once, do all math in f32.
        u_mlp = u_mlp_ref[...].astype(jnp.float32)
        i_mlp = i_mlp_ref[...].astype(jnp.float32)
        u_mf = u_mf_ref[...].astype(jnp.float32)
        i_mf = i_mf_ref[...].astype(jnp.float32)

        # MLP tower: concat along features, then (Linear + ReLU) per hidden layer.
        h = jnp.concatenate([u_mlp, i_mlp], axis=-1)            # (tile, layers[0])
        for l in range(n_hidden):
            w = params[2 * l][...]                              # (in, out)
            b = params[2 * l + 1][...]                          # (1, out)
            h = jnp.dot(h, w, preferred_element_type=jnp.float32) + b
            h = jnp.maximum(h, 0.0)                             # ReLU

        # GMF branch and final feature concat.
        mf = u_mf * i_mf                                        # (tile, E_mf)
        vector = jnp.concatenate([h, mf], axis=-1)              # (tile, D_final)

        # Final 1-wide affine, contracted so the result comes out as a
        # lane-dense (1, tile) row (unmasked stores) instead of a (tile, 1)
        # column of masked partial stores.
        w_out = params[-2][...]                                 # (1, D_final)  (PyTorch layout)
        b_out = params[-1][...]                                 # (1, 1)
        logits = jnp.einsum(
            "od,bd->ob", w_out, vector,
            preferred_element_type=jnp.float32,
        ) + b_out                                               # (1, tile)
        out_ref[...] = jax.nn.sigmoid(logits)

    return kernel


def neumf_forward_pallas(u_mlp, i_mlp, u_mf, i_mf,
                         fc_weights, fc_biases, out_weight, out_bias,
                         *, batch_tile=256):
    """u_mlp/i_mlp: (B, E_mlp) bf16; u_mf/i_mf: (B, E_mf) bf16.
    fc_weights[i]: (in, out) f32; fc_biases[i]: (1, out) f32.
    out_weight: (1, layers[-1]+E_mf) f32 (nn.Linear layout); out_bias: (1, 1) f32.
    Returns (B,) f32 ratings."""
    assert batch_tile % 128 == 0, "batch_tile must be a multiple of 128 (lane-dense output)"
    B = u_mlp.shape[0]
    n_hidden = len(fc_weights)

    # Ragged batches: pad up to a tile multiple; slice the tail off at the end.
    B_pad = pl.cdiv(B, batch_tile) * batch_tile
    if B_pad != B:
        pad = ((0, B_pad - B), (0, 0))
        u_mlp = jnp.pad(u_mlp, pad)
        i_mlp = jnp.pad(i_mlp, pad)
        u_mf = jnp.pad(u_mf, pad)
        i_mf = jnp.pad(i_mf, pad)

    kernel = _make_neumf_kernel(n_hidden)

    def stream_spec(feat):
        # Batch-tiled input: tile i+1 is prefetched while tile i computes.
        return pl.BlockSpec((batch_tile, feat), lambda i: (i, 0))

    def resident_spec(shape):
        # Whole (tiny) parameter resident in VMEM; same block every grid step.
        return pl.BlockSpec(shape, lambda i: (0,) * len(shape))

    in_specs = [
        stream_spec(u_mlp.shape[1]),
        stream_spec(i_mlp.shape[1]),
        stream_spec(u_mf.shape[1]),
        stream_spec(i_mf.shape[1]),
    ]
    flat_params = []
    for w, b in zip(fc_weights, fc_biases):
        in_specs += [resident_spec(w.shape), resident_spec(b.shape)]
        flat_params += [w, b]
    in_specs += [resident_spec(out_weight.shape), resident_spec(out_bias.shape)]
    flat_params += [out_weight, out_bias]

    # Lane-dense output: (1, B_pad), block (1, batch_tile).
    out_specs = pl.BlockSpec((1, batch_tile), lambda i: (0, i))

    fn = pl.pallas_call(
        kernel,
        out_shape=jax.ShapeDtypeStruct((1, B_pad), jnp.float32),
        grid_spec=pltpu.PrefetchScalarGridSpec(
            num_scalar_prefetch=0,
            grid=(B_pad // batch_tile,),
            in_specs=in_specs,
            out_specs=out_specs,
        ),
        compiler_params=pltpu.CompilerParams(
            dimension_semantics=("parallel",),          # shardable across v7x's 2 TCs
            vmem_limit_bytes=32 * 1024 * 1024,          # explicit, portable VMEM budget
        ),
    )
    out = fn(u_mlp, i_mlp, u_mf, i_mf, *flat_params)
    return out[0, :B]                                    # == rating.squeeze() in the module


def neumf_forward(user_indices, item_indices, params, *, batch_tile=256):
    """Full NeuMF forward matching the PyTorch module semantics."""
    u_mlp = jnp.take(params["embedding_user_mlp"], user_indices, axis=0)
    i_mlp = jnp.take(params["embedding_item_mlp"], item_indices, axis=0)
    u_mf = jnp.take(params["embedding_user_mf"], user_indices, axis=0)
    i_mf = jnp.take(params["embedding_item_mf"], item_indices, axis=0)
    # Stream gathered activations in bf16 (HBM-bound kernel); math stays f32 inside.
    bf16 = jnp.bfloat16
    return neumf_forward_pallas(
        u_mlp.astype(bf16), i_mlp.astype(bf16), u_mf.astype(bf16), i_mf.astype(bf16),
        params["fc_weights"], params["fc_biases"],
        params["out_weight"], params["out_bias"],
        batch_tile=batch_tile,
    )


def init_params(key, num_users, num_items, embed_size_mf, layers):
    """Deterministic synthetic parameter init; shapes match the nn.Module."""
    embed_size_mlp = layers[0] // 2
    n_lin = len(layers) - 1
    keys = jax.random.split(key, 6 + 2 * n_lin)
    # Larger embedding scale than the module's init so outputs vary (better test signal).
    params = {
        "embedding_user_mlp": 0.5 * jax.random.normal(keys[0], (num_users, embed_size_mlp), jnp.float32),
        "embedding_item_mlp": 0.5 * jax.random.normal(keys[1], (num_items, embed_size_mlp), jnp.float32),
        "embedding_user_mf": 0.5 * jax.random.normal(keys[2], (num_users, embed_size_mf), jnp.float32),
        "embedding_item_mf": 0.5 * jax.random.normal(keys[3], (num_items, embed_size_mf), jnp.float32),
        "fc_weights": [],
        "fc_biases": [],
    }
    k = 4
    for in_size, out_size in zip(layers[:-1], layers[1:]):
        limit = (6.0 / (in_size + out_size)) ** 0.5            # xavier_uniform
        # nn.Linear stores (out, in); we store the transposed (in, out) for x @ W.
        w = jax.random.uniform(keys[k], (in_size, out_size), jnp.float32, -limit, limit)
        b = 0.01 * jax.random.normal(keys[k + 1], (1, out_size), jnp.float32)
        params["fc_weights"].append(w)
        params["fc_biases"].append(b)
        k += 2
    d_final = layers[-1] + embed_size_mf
    limit = (6.0 / (d_final + 1)) ** 0.5
    # affine_output keeps PyTorch layout (out_features=1, in_features=d_final).
    params["out_weight"] = jax.random.uniform(keys[k], (1, d_final), jnp.float32, -limit, limit)
    params["out_bias"] = 0.01 * jax.random.normal(keys[k + 1], (1, 1), jnp.float32)
    return params


def reference_forward(user_indices, item_indices, params):
    """Pure-JAX reference (module semantics in f32), with the gathered embeddings
    rounded through bf16 exactly as the Pallas path streams them."""
    rb = lambda x: x.astype(jnp.bfloat16).astype(jnp.float32)
    u_mlp = rb(jnp.take(params["embedding_user_mlp"], user_indices, axis=0))
    i_mlp = rb(jnp.take(params["embedding_item_mlp"], item_indices, axis=0))
    u_mf = rb(jnp.take(params["embedding_user_mf"], user_indices, axis=0))
    i_mf = rb(jnp.take(params["embedding_item_mf"], item_indices, axis=0))
    v = jnp.concatenate([u_mlp, i_mlp], axis=-1)
    for w, b in zip(params["fc_weights"], params["fc_biases"]):
        v = jnp.maximum(v @ w + b, 0.0)
    mf = u_mf * i_mf
    vector = jnp.concatenate([v, mf], axis=-1)
    logits = vector @ params["out_weight"].T + params["out_bias"]
    return jax.nn.sigmoid(logits)[:, 0]                        # == rating.squeeze()


if __name__ == "__main__":
    # Small deterministic config consistent with the module's forward:
    #   layers = [16, 32, 16, 8]  ->  embed_size_mlp = 8;  embed_size_mf = 8
    #   affine_output: (layers[-1] + embed_size_mf) = 16 -> 1, sigmoid, squeeze.
    num_users, num_items = 64, 96
    embed_size_mf = 8
    layers = [16, 32, 16, 8]
    batch = 1000          # deliberately ragged; padded to the tile internally
    batch_tile = 256      # multiple of 128 -> lane-dense stores; grid of 4 pipelined steps

    key = jax.random.PRNGKey(0)
    kp, ku, ki = jax.random.split(key, 3)
    params = init_params(kp, num_users, num_items, embed_size_mf, layers)

    user_indices = jax.random.randint(ku, (batch,), 0, num_users, dtype=jnp.int32)
    item_indices = jax.random.randint(ki, (batch,), 0, num_items, dtype=jnp.int32)

    rating = neumf_forward(user_indices, item_indices, params, batch_tile=batch_tile)
    rating = jax.block_until_ready(rating)

    ref = reference_forward(user_indices, item_indices, params)
    assert rating.shape == (batch,)
    assert jnp.allclose(rating, ref, atol=1e-4, rtol=1e-4), "mismatch vs reference"

    print("KERNEL_OK")
</pallas_src>

<mosaic_0001>
module attributes {stable_mosaic.version = 11 : i64} {
  func.func @kernel(%arg0: i32, %arg1: memref<256x8xbf16, #tpu.memory_space<vmem>>, %arg2: memref<256x8xbf16, #tpu.memory_space<vmem>>, %arg3: memref<256x8xbf16, #tpu.memory_space<vmem>>, %arg4: memref<256x8xbf16, #tpu.memory_space<vmem>>, %arg5: memref<16x32xf32, #tpu.memory_space<vmem>>, %arg6: memref<1x32xf32, #tpu.memory_space<vmem>>, %arg7: memref<32x16xf32, #tpu.memory_space<vmem>>, %arg8: memref<1x16xf32, #tpu.memory_space<vmem>>, %arg9: memref<16x8xf32, #tpu.memory_space<vmem>>, %arg10: memref<1x8xf32, #tpu.memory_space<vmem>>, %arg11: memref<1x16xf32, #tpu.memory_space<vmem>>, %arg12: memref<1x1xf32, #tpu.memory_space<vmem>>, %arg13: memref<1x256xf32, #tpu.memory_space<vmem>>) attributes {dimension_semantics = [#tpu.dimension_semantics<parallel>], iteration_bounds = array<i64: 4>, scalar_prefetch = 0 : i64, scratch_operands = 0 : i64, tpu.core_type = #tpu.core_type<tc>, window_params = [{transform_indices = @transform_0, window_bounds = array<i64: 256, 8>}, {transform_indices = @transform_1, window_bounds = array<i64: 256, 8>}, {transform_indices = @transform_2, window_bounds = array<i64: 256, 8>}, {transform_indices = @transform_3, window_bounds = array<i64: 256, 8>}, {pipeline_mode = #tpu.pipeline_mode<synchronous>, transform_indices = @transform_4, window_bounds = array<i64: 16, 32>}, {pipeline_mode = #tpu.pipeline_mode<synchronous>, transform_indices = @transform_5, window_bounds = array<i64: 1, 32>}, {pipeline_mode = #tpu.pipeline_mode<synchronous>, transform_indices = @transform_6, window_bounds = array<i64: 32, 16>}, {pipeline_mode = #tpu.pipeline_mode<synchronous>, transform_indices = @transform_7, window_bounds = array<i64: 1, 16>}, {pipeline_mode = #tpu.pipeline_mode<synchronous>, transform_indices = @transform_8, window_bounds = array<i64: 16, 8>}, {pipeline_mode = #tpu.pipeline_mode<synchronous>, transform_indices = @transform_9, window_bounds = array<i64: 1, 8>}, {pipeline_mode = #tpu.pipeline_mode<synchronous>, transform_indices = @transform_10, window_bounds = array<i64: 1, 16>}, {pipeline_mode = #tpu.pipeline_mode<synchronous>, transform_indices = @transform_11, window_bounds = array<i64: 1, 1>}, {transform_indices = @transform_12, window_bounds = array<i64: 1, 256>}]} {
    %c0 = arith.constant 0 : index
    %c0_0 = arith.constant 0 : index
    %0 = vector.load %arg1[%c0, %c0_0] : memref<256x8xbf16, #tpu.memory_space<vmem>>, vector<256x8xbf16>
    %1 = arith.extf %0 : vector<256x8xbf16> to vector<256x8xf32>
    %c0_1 = arith.constant 0 : index
    %c0_2 = arith.constant 0 : index
    %2 = vector.load %arg2[%c0_1, %c0_2] : memref<256x8xbf16, #tpu.memory_space<vmem>>, vector<256x8xbf16>
    %3 = arith.extf %2 : vector<256x8xbf16> to vector<256x8xf32>
    %c0_3 = arith.constant 0 : index
    %c0_4 = arith.constant 0 : index
    %4 = vector.load %arg3[%c0_3, %c0_4] : memref<256x8xbf16, #tpu.memory_space<vmem>>, vector<256x8xbf16>
    %5 = arith.extf %4 : vector<256x8xbf16> to vector<256x8xf32>
    %c0_5 = arith.constant 0 : index
    %c0_6 = arith.constant 0 : index
    %6 = vector.load %arg4[%c0_5, %c0_6] : memref<256x8xbf16, #tpu.memory_space<vmem>>, vector<256x8xbf16>
    %7 = arith.extf %6 : vector<256x8xbf16> to vector<256x8xf32>
    %8 = tpu.concatenate %1, %3 in 1 : vector<256x8xf32>, vector<256x8xf32> -> vector<256x16xf32>
    %c0_7 = arith.constant 0 : index
    %c0_8 = arith.constant 0 : index
    %9 = vector.load %arg5[%c0_7, %c0_8] : memref<16x32xf32, #tpu.memory_space<vmem>>, vector<16x32xf32>
    %c0_9 = arith.constant 0 : index
    %c0_10 = arith.constant 0 : index
    %10 = vector.load %arg6[%c0_9, %c0_10] : memref<1x32xf32, #tpu.memory_space<vmem>>, vector<1x32xf32>
    %cst = arith.constant dense<0.000000e+00> : vector<256x32xf32>
    %11 = tpu.matmul %8, %9, %cst {dimension_numbers = #tpu.dot_dimension_numbers<[1], [0], [0], [1], [0, 0, 1, 1], [], []>} : vector<256x16xf32>, vector<16x32xf32>, vector<256x32xf32> -> vector<256x32xf32>
    %12 = vector.broadcast %10 : vector<1x32xf32> to vector<256x32xf32>
    %13 = arith.addf %11, %12 : vector<256x32xf32>
    %cst_11 = arith.constant 0.000000e+00 : f32
    %14 = vector.broadcast %cst_11 : f32 to vector<256x32xf32>
    %15 = arith.maximumf %13, %14 : vector<256x32xf32>
    %c0_12 = arith.constant 0 : index
    %c0_13 = arith.constant 0 : index
    %16 = vector.load %arg7[%c0_12, %c0_13] : memref<32x16xf32, #tpu.memory_space<vmem>>, vector<32x16xf32>
    %c0_14 = arith.constant 0 : index
    %c0_15 = arith.constant 0 : index
    %17 = vector.load %arg8[%c0_14, %c0_15] : memref<1x16xf32, #tpu.memory_space<vmem>>, vector<1x16xf32>
    %cst_16 = arith.constant dense<0.000000e+00> : vector<256x16xf32>
    %18 = tpu.matmul %15, %16, %cst_16 {dimension_numbers = #tpu.dot_dimension_numbers<[1], [0], [0], [1], [0, 0, 1, 1], [], []>} : vector<256x32xf32>, vector<32x16xf32>, vector<256x16xf32> -> vector<256x16xf32>
    %19 = vector.broadcast %17 : vector<1x16xf32> to vector<256x16xf32>
    %20 = arith.addf %18, %19 : vector<256x16xf32>
    %cst_17 = arith.constant 0.000000e+00 : f32
    %21 = vector.broadcast %cst_17 : f32 to vector<256x16xf32>
    %22 = arith.maximumf %20, %21 : vector<256x16xf32>
    %c0_18 = arith.constant 0 : index
    %c0_19 = arith.constant 0 : index
    %23 = vector.load %arg9[%c0_18, %c0_19] : memref<16x8xf32, #tpu.memory_space<vmem>>, vector<16x8xf32>
    %c0_20 = arith.constant 0 : index
    %c0_21 = arith.constant 0 : index
    %24 = vector.load %arg10[%c0_20, %c0_21] : memref<1x8xf32, #tpu.memory_space<vmem>>, vector<1x8xf32>
    %cst_22 = arith.constant dense<0.000000e+00> : vector<256x8xf32>
    %25 = tpu.matmul %22, %23, %cst_22 {dimension_numbers = #tpu.dot_dimension_numbers<[1], [0], [0], [1], [0, 0, 1, 1], [], []>} : vector<256x16xf32>, vector<16x8xf32>, vector<256x8xf32> -> vector<256x8xf32>
    %26 = vector.broadcast %24 : vector<1x8xf32> to vector<256x8xf32>
    %27 = arith.addf %25, %26 : vector<256x8xf32>
    %cst_23 = arith.constant 0.000000e+00 : f32
    %28 = vector.broadcast %cst_23 : f32 to vector<256x8xf32>
    %29 = arith.maximumf %27, %28 : vector<256x8xf32>
    %30 = arith.mulf %5, %7 : vector<256x8xf32>
    %31 = tpu.concatenate %29, %30 in 1 : vector<256x8xf32>, vector<256x8xf32> -> vector<256x16xf32>
    %c0_24 = arith.constant 0 : index
    %c0_25 = arith.constant 0 : index
    %32 = vector.load %arg11[%c0_24, %c0_25] : memref<1x16xf32, #tpu.memory_space<vmem>>, vector<1x16xf32>
    %c0_26 = arith.constant 0 : index
    %c0_27 = arith.constant 0 : index
    %33 = vector.load %arg12[%c0_26, %c0_27] : memref<1x1xf32, #tpu.memory_space<vmem>>, vector<1x1xf32>
    "tpu.trace_start"() <{level = 10 : i32, message = "od,bd->ob"}> : () -> ()
    %cst_28 = arith.constant dense<0.000000e+00> : vector<1x256xf32>
    %34 = tpu.matmul %32, %31, %cst_28 {dimension_numbers = #tpu.dot_dimension_numbers<[1], [1], [0], [0], [0, 0, 1, 0], [], []>} : vector<1x16xf32>, vector<256x16xf32>, vector<1x256xf32> -> vector<1x256xf32>
    "tpu.trace_stop"() : () -> ()
    %35 = vector.broadcast %33 : vector<1x1xf32> to vector<1x256xf32>
    %36 = arith.addf %34, %35 : vector<1x256xf32>
    %37 = arith.negf %36 : vector<1x256xf32>
    %38 = math.exp %37 : vector<1x256xf32>
    %cst_29 = arith.constant 1.000000e+00 : f32
    %39 = vector.broadcast %cst_29 : f32 to vector<1x256xf32>
    %40 = arith.addf %39, %38 : vector<1x256xf32>
    %41 = arith.divf %39, %40 : vector<1x256xf32>
    %c0_30 = arith.constant 0 : index
    %c0_31 = arith.constant 0 : index
    %42 = vector.load %arg13[%c0_30, %c0_31] : memref<1x256xf32, #tpu.memory_space<vmem>>, vector<1x256xf32>
    tpu.vector_store %arg13[%c0_30, %c0_31], %41 {strides = array<i32>} : memref<1x256xf32, #tpu.memory_space<vmem>>, vector<1x256xf32>,
    return
  }
  func.func @transform_0(%arg0: i32) -> (i32, i32) {
    %c0_i32 = arith.constant 0 : i32
    %c0_i32_0 = arith.constant 0 : i32
    return %arg0, %c0_i32 : i32, i32
  }
  func.func @transform_1(%arg0: i32) -> (i32, i32) {
    %c0_i32 = arith.constant 0 : i32
    %c0_i32_0 = arith.constant 0 : i32
    return %arg0, %c0_i32 : i32, i32
  }
  func.func @transform_2(%arg0: i32) -> (i32, i32) {
    %c0_i32 = arith.constant 0 : i32
    %c0_i32_0 = arith.constant 0 : i32
    return %arg0, %c0_i32 : i32, i32
  }
  func.func @transform_3(%arg0: i32) -> (i32, i32) {
    %c0_i32 = arith.constant 0 : i32
    %c0_i32_0 = arith.constant 0 : i32
    return %arg0, %c0_i32 : i32, i32
  }
  func.func @transform_4(%arg0: i32) -> (i32, i32) {
    %c0_i32 = arith.constant 0 : i32
    %c0_i32_0 = arith.constant 0 : i32
    %c0_i32_1 = arith.constant 0 : i32
    return %c0_i32, %c0_i32_0 : i32, i32
  }
  func.func @transform_5(%arg0: i32) -> (i32, i32) {
    %c0_i32 = arith.constant 0 : i32
    %c0_i32_0 = arith.constant 0 : i32
    %c0_i32_1 = arith.constant 0 : i32
    return %c0_i32, %c0_i32_0 : i32, i32
  }
  func.func @transform_6(%arg0: i32) -> (i32, i32) {
    %c0_i32 = arith.constant 0 : i32
    %c0_i32_0 = arith.constant 0 : i32
    %c0_i32_1 = arith.constant 0 : i32
    return %c0_i32, %c0_i32_0 : i32, i32
  }
  func.func @transform_7(%arg0: i32) -> (i32, i32) {
    %c0_i32 = arith.constant 0 : i32
    %c0_i32_0 = arith.constant 0 : i32
    %c0_i32_1 = arith.constant 0 : i32
    return %c0_i32, %c0_i32_0 : i32, i32
  }
  func.func @transform_8(%arg0: i32) -> (i32, i32) {
    %c0_i32 = arith.constant 0 : i32
    %c0_i32_0 = arith.constant 0 : i32
    %c0_i32_1 = arith.constant 0 : i32
    return %c0_i32, %c0_i32_0 : i32, i32
  }
  func.func @transform_9(%arg0: i32) -> (i32, i32) {
    %c0_i32 = arith.constant 0 : i32
    %c0_i32_0 = arith.constant 0 : i32
    %c0_i32_1 = arith.constant 0 : i32
    return %c0_i32, %c0_i32_0 : i32, i32
  }
  func.func @transform_10(%arg0: i32) -> (i32, i32) {
    %c0_i32 = arith.constant 0 : i32
    %c0_i32_0 = arith.constant 0 : i32
    %c0_i32_1 = arith.constant 0 : i32
    return %c0_i32, %c0_i32_0 : i32, i32
  }
  func.func @transform_11(%arg0: i32) -> (i32, i32) {
    %c0_i32 = arith.constant 0 : i32
    %c0_i32_0 = arith.constant 0 : i32
    %c0_i32_1 = arith.constant 0 : i32
    return %c0_i32, %c0_i32_0 : i32, i32
  }
  func.func @transform_12(%arg0: i32) -> (i32, i32) {
    %c0_i32 = arith.constant 0 : i32
    %c0_i32_0 = arith.constant 0 : i32
    return %c0_i32, %arg0 : i32, i32
  }
}

</mosaic_0001>

<bundles_post_ra>
// kernel: tpu_custom_call.1
= control target key start
LH: loop header
LB: loop body
LE: loop exit
PB: predicated region body
PF: predicated region fallthrough
CT: control target
= control target key end

     0   :  { %s4188_s0 = inlined_call_operand.vmem [shape: bf16[1024,8], index: 0, kind: input, shape index: {}]   ;;  %s4189_s1 = inlined_call_operand.vmem [shape: bf16[1024,8], index: 1, kind: input, shape index: {}]   ;;  %s4190_s2 = inlined_call_operand.vmem [shape: bf16[1024,8], index: 2, kind: input, shape index: {}]   ;;  %s4191_s3 = inlined_call_operand.vmem [shape: bf16[1024,8], index: 3, kind: input, shape index: {}]   ;;  %s4192_s4 = inlined_call_operand.vmem [shape: f32[16,32], index: 4, kind: input, shape index: {}]   ;;  %s4193_s5 = inlined_call_operand.vmem [shape: f32[1,32], index: 5, kind: input, shape index: {}]   ;;  %s4194_s6 = inlined_call_operand.vmem [shape: f32[32,16], index: 6, kind: input, shape index: {}]   ;;  %s4195_s7 = inlined_call_operand.vmem [shape: f32[1,16], index: 7, kind: input, shape index: {}]   ;;  %s4196_s8 = inlined_call_operand.vmem [shape: f32[16,8], index: 8, kind: input, shape index: {}]   ;;  %s4197_s9 = inlined_call_operand.vmem [shape: f32[1,8], index: 9, kind: input, shape index: {}]   ;;  %s4198_s10 = inlined_call_operand.vmem [shape: f32[1,16], index: 10, kind: input, shape index: {}]   ;;  %s4199_s11 = inlined_call_operand.<no memory space> [shape: f32[1,1], index: 11, kind: input, shape index: {}]   ;;  %s4200_s12 = inlined_call_operand.hbm [shape: f32[1,1024], index: 12, kind: output, shape index: {}]  }
   0x1   :  { %4201 = sst [smem:[#allocation6_spill]] %s4188_s0  ;;  %v17_v0 = vstv %s4199_s11 }
   0x2   :  { %4202 = sst [smem:[#allocation7_spill]] %s4189_s1  ;;  %18 = vst [vmem:[#allocation2] sm:$0x1] %v17_v0 }
   0x3   :  { %19 = vsyncpa [#allocation4], 0 }
   0x4   :  { %21 = vsyncpa [#allocation4 + $0x1], 0  ;;  %s3544_s23 = smov 0   ;;  %s3546_s24 = smov 0  }
   0x5   :  { %s3548_s25 = smov 0   ;;  %s3550_s26 = smov 0  }
   0x6 LB: > { %s2507_s11 = sadd.s32 4294967295, %s3470_s26   ;;  %s2508_s27 = sadd.s32 4294967294, %s3470_s26   ;;  %s3470_s26 = sphi %s3550_s26, %s4210_s26   ;;  %s3466_s25 = sphi %s3548_s25, %s4209_s25   ;;  %s3462_s24 = sphi %s3546_s24, %s4208_s24   ;;  %s3458_s23 = sphi %s3544_s23, %s4207_s23  }
   0x7   : > { %s3567_s28 = sadd.s32 1, %s3470_s26   ;;  %s306_s29 = sadd.s32 1, %s3466_s25 }
   0x8   : > { %s303_s30 = ssub.s32 %s3470_s26, %s3567_s28  ;;  %p316_p0 = scmp.ne.s32.totalorder %s3466_s25, %s3462_s24 }
   0x9   : > { %p304_p1 = scmp.eq.s32.totalorder %s303_s30, 0  ;;  %p317_p2 = scmp.eq.s32.totalorder %s2507_s11, 3 }
   0xa   : > { %p322_p3 = scmp.ne.s32.totalorder %s3462_s24, %s3458_s23  ;;  %p323_p4 = scmp.eq.s32.totalorder %s2508_s27, 3 }
   0xb   : > { %s3577_s13 = scalar_select %p304_p1, %s3466_s25, %s306_s29  }
   0xc   : > { %p3579_p5 = por %p317_p2, %p316_p0  ;;  %p3583_p6 = por %p323_p4, %p322_p3 }
   0xd   : > { %p2511_p7 = scmp.ge.s32.totalorder %s3470_s26, 1  ;;  %p401_p8 = scmp.lt.s32.totalorder %s3470_s26, 5 }
   0xf   : > { %p402_p9 = pnand %p2511_p7, %p401_p8 }
  0x10   : > { %s3589_s16 = sshll.u32 (!%p402_p9), %s2507_s11, 5  ;;  %s4205_s1 = sld [smem:[#allocation7_spill]] (!%p402_p9) }
  0x11   : > { %405 = sbr.rel (%p402_p9) target bundleno = 1120 (0x460), region = 68  ;;  %p459_p10 = scmp.lt.s32.totalorder (!%p402_p9), %s3589_s16, 127 }
  0x12   : > { %s3472_s30 = smov (!%p402_p9), 8   ;;  %s4206_s0 = sld [smem:[#allocation6_spill]] (!%p402_p9) }
  0x13   : > { %s3475_s19 = smov (!%p402_p9), [#allocation3]  }
  0x16   : > { %v901_v1 = vld [vmem:[%s4192_s4 + $0x8] sm:$0xff]  ;;  %v900_v2 = vld [vmem:[%s4192_s4] sm:$0xff]  ;;  %s460_s21 = scalar_select %p459_p10, %s3589_s16, 127  ;;  %vm867_vm0 = vcmask 64512   ;;  %vm909_vm1 = vcmask 130048   ;;  %vm1274_vm2 = vcmask 261120  }
  0x17   : > { %3115 = vmatprep.subr.mxu0 %v901_v1  ;;  %3275 = vmatprep.subr.mxu1 %v901_v1 }
  0x18   : > { %3116 = vmatpush3.msra.mxu0 %v901_v1  ;;  %3277 = vmatpush3.msra.mxu1 %v901_v1  ;;  %s3599_s22 = sshll.u32 %s460_s21, 2 }
  0x19   : > { %3117 = vmatprep.subr.mxu0 %v900_v2  ;;  %3276 = vmatprep.subr.mxu1 %v900_v2  ;;  %s3605_s29 = scalar_lea.vmem %s4205_s1, %s3599_s22  ;;  %s3649_s21 = scalar_lea.vmem %s4206_s0, %s3599_s22 }
  0x1a   : > { %3118 = vmatpush3.msra.mxu0 %v900_v2  ;;  %3278 = vmatpush3.msra.mxu1 %v900_v2  ;;  %v2726_v3 = vld [vmem:[%s3605_s29] sm:$0xff]   ;;  %v2932_v4 = vld [vmem:[%s3605_s29 + $0x8] sm:$0xff]   ;;  %v2933_v5 = vld [vmem:[%s3605_s29 + $0x10] sm:$0xff]   ;;  %s3840_s20 = scalar_lea.vmem %s4190_s2, %s3599_s22  ;;  %s3846_s27 = scalar_lea.vmem %s4191_s3, %s3599_s22 }
  0x1b   : > { %v2727_v6 = vunpack.c.l.bf16 %v2726_v3  ;;  %v2728_v7 = vunpack.c.h.bf16 %v2726_v3  ;;  %v2731_v8 = vunpack.c.l.bf16 %v2932_v4  ;;  %v2732_v9 = vunpack.c.h.bf16 %v2932_v4  ;;  %v2934_v10 = vld [vmem:[%s3605_s29 + $0x18] sm:$0xff]   ;;  %v2935_v15 = vld [vmem:[%s3605_s29 + $0x20] sm:$0xff]   ;;  %v2936_v17 = vld [vmem:[%s3605_s29 + $0x28] sm:$0xff]   ;;  %s3414_s0 = sshll.u32 %s3475_s19, 4  ;;  %s3415_s0 = int_to_ptr.vmem [resolvable:$false] %s3414_s0 }
  0x1c   : > { %v2735_v11 = vunpack.c.l.bf16 %v2933_v5  ;;  %v2736_v12 = vunpack.c.h.bf16 %v2933_v5  ;;  %v2739_v13 = vunpack.c.l.bf16 %v2934_v10  ;;  %v2740_v14 = vunpack.c.h.bf16 %v2934_v10  ;;  %v2937_v25 = vld [vmem:[%s3605_s29 + $0x30] sm:$0xff]   ;;  %v2938_v26 = vld [vmem:[%s3605_s29 + $0x38] sm:$0xff]   ;;  %v2939_v33 = vld [vmem:[%s3605_s29 + $0x40] sm:$0xff]  }
  0x1d   : > { %v3321_v16 = vpack.i.bf16 %v2728_v7, %v2727_v6  ;;  %v3326_v19 = vpack.i.bf16 %v2732_v9, %v2731_v8  ;;  %v2743_v20 = vunpack.c.l.bf16 %v2935_v15  ;;  %v2744_v21 = vunpack.c.h.bf16 %v2935_v15  ;;  %v2940_v34 = vld [vmem:[%s3605_s29 + $0x48] sm:$0xff]   ;;  %v2941_v41 = vld [vmem:[%s3605_s29 + $0x50] sm:$0xff]   ;;  %v2942_v42 = vld [vmem:[%s3605_s29 + $0x58] sm:$0xff]  }
  0x1e   : > { %v3331_v18 = vpack.i.bf16 %v2736_v12, %v2735_v11  ;;  %v3336_v22 = vpack.i.bf16 %v2740_v14, %v2739_v13  ;;  %v2747_v23 = vunpack.c.l.bf16 %v2936_v17  ;;  %v2748_v24 = vunpack.c.h.bf16 %v2936_v17  ;;  %v2943_v49 = vld [vmem:[%s3605_s29 + $0x60] sm:$0xff]   ;;  %v2944_v50 = vld [vmem:[%s3605_s29 + $0x68] sm:$0xff]   ;;  %v2945_v57 = vld [vmem:[%s3605_s29 + $0x70] sm:$0xff]  }
  0x1f   : > { %3322 = vrot.lane.b32.xlu0 %v3321_v16, %s3472_s30  ;;  %v3341_v27 = vpack.i.bf16 %v2744_v21, %v2743_v20  ;;  %v2751_v28 = vunpack.c.l.bf16 %v2937_v25  ;;  %v2752_v29 = vunpack.c.h.bf16 %v2937_v25  ;;  %v2755_v31 = vunpack.c.l.bf16 %v2938_v26  ;;  %v2946_v58 = vld [vmem:[%s3605_s29 + $0x78] sm:$0xff]   ;;  %v2662_v4 = vld [vmem:[%s3649_s21] sm:$0xff]   ;;  %v2917_v7 = vld [vmem:[%s3649_s21 + $0x8] sm:$0xff]  }
  0x20   : > { %3332 = vrot.lane.b32.xlu1 %v3331_v18, %s3472_s30  ;;  %v3346_v30 = vpack.i.bf16 %v2748_v24, %v2747_v23  ;;  %v2756_v32 = vunpack.c.h.bf16 %v2938_v26  ;;  %v2759_v36 = vunpack.c.l.bf16 %v2939_v33  ;;  %v2760_v37 = vunpack.c.h.bf16 %v2939_v33  ;;  %v3642_v3 = vld [vmem:[%s4194_s6 + $0x18] sm:$0xff]  ;;  %v2918_v9 = vld [vmem:[%s3649_s21 + $0x10] sm:$0xff]  }
  0x21   : > { %v3351_v35 = vpack.i.bf16 %v2752_v29, %v2751_v28  ;;  %v2763_v39 = vunpack.c.l.bf16 %v2940_v34  ;;  %v2764_v40 = vunpack.c.h.bf16 %v2940_v34  ;;  %v2767_v44 = vunpack.c.l.bf16 %v2941_v41  ;;  %3167 = vmatprep.subr.mxu1 %v3642_v3 }
  0x22   : > { %v3356_v38 = vpack.i.bf16 %v2756_v32, %v2755_v31  ;;  %v3361_v43 = vpack.i.bf16 %v2760_v37, %v2759_v36  ;;  %v2768_v45 = vunpack.c.h.bf16 %v2941_v41  ;;  %v2771_v47 = vunpack.c.l.bf16 %v2942_v42  ;;  %v2920_v32 = vld [vmem:[%s3649_s21 + $0x20] sm:$0xff]   ;;  %v2921_v41 = vld [vmem:[%s3649_s21 + $0x28] sm:$0xff]  }
  0x23   : > { %3327 = vrot.lane.b32.xlu0 %v3326_v19, %s3472_s30  ;;  %v3366_v46 = vpack.i.bf16 %v2764_v40, %v2763_v39  ;;  %v2772_v48 = vunpack.c.h.bf16 %v2942_v42  ;;  %v2775_v52 = vunpack.c.l.bf16 %v2943_v49  ;;  %v2776_v53 = vunpack.c.h.bf16 %v2943_v49  ;;  %v2919_v19 = vld [vmem:[%s3649_s21 + $0x18] sm:$0xff]  }
  0x24   : > { %3337 = vrot.lane.b32.xlu1 %v3336_v22, %s3472_s30  ;;  %v3371_v51 = vpack.i.bf16 %v2768_v45, %v2767_v44  ;;  %v2779_v55 = vunpack.c.l.bf16 %v2944_v50  ;;  %v2780_v56 = vunpack.c.h.bf16 %v2944_v50  ;;  %v2783_v60 = vunpack.c.l.bf16 %v2945_v57 }
  0x25   : > { %v3376_v54 = vpack.i.bf16 %v2772_v48, %v2771_v47  ;;  %v3381_v59 = vpack.i.bf16 %v2776_v53, %v2775_v52  ;;  %v2784_v61 = vunpack.c.h.bf16 %v2945_v57  ;;  %v2787_v63 = vunpack.c.l.bf16 %v2946_v58  ;;  %v3678_v47 = vld [vmem:[%s3649_s21 + $0x30] sm:$0xff]  }
  0x26   : > { %v3386_v62 = vpack.i.bf16 %v2780_v56, %v2779_v55  ;;  %v2788_v0 = vunpack.c.h.bf16 %v2946_v58  ;;  %v2663_v5 = vunpack.c.l.bf16 %v2662_v4  ;;  %v2664_v6 = vunpack.c.h.bf16 %v2662_v4  ;;  %v2927_v58 = vld [vmem:[%s3649_s21 + $0x58] sm:$0xff]  }
  0x27   : > { %3342 = vrot.lane.b32.xlu0 %v3341_v27, %s3472_s30  ;;  %v3391_v1 = vpack.i.bf16 %v2784_v61, %v2783_v60  ;;  %v2667_v13 = vunpack.c.l.bf16 %v2917_v7  ;;  %v2668_v14 = vunpack.c.h.bf16 %v2917_v7  ;;  %v2671_v18 = vunpack.c.l.bf16 %v2918_v9  ;;  %v3690_v61 = vld [vmem:[%s3649_s21 + $0x38] sm:$0xff]  }
  0x28   : > { %3347 = vrot.lane.b32.xlu1 %v3346_v30, %s3472_s30  ;;  %v3396_v2 = vpack.i.bf16 %v2788_v0, %v2787_v63  ;;  %v2672_v25 = vunpack.c.h.bf16 %v2918_v9  ;;  %v2675_v26 = vunpack.c.l.bf16 %v2919_v19  ;;  %v2676_v36 = vunpack.c.h.bf16 %v2919_v19 }
  0x29   : > { %v2679_v39 = vunpack.c.l.bf16 %v2920_v32  ;;  %v2683_v50 = vunpack.c.l.bf16 %v2921_v41  ;;  %v2684_v55 = vunpack.c.h.bf16 %v2921_v41  ;;  %v2687_v56 = vunpack.c.l.bf16 %v3678_v47 }
  0x2a   : > { %v2707_v9 = vunpack.c.l.bf16 %v2927_v58 }
  0x2b   : > { %3352 = vrot.lane.b32.xlu0 %v3351_v35, %s3472_s30 }
  0x2c   : > { %3357 = vrot.lane.b32.xlu1 %v3356_v38, %s3472_s30 }
  0x2f   : > { %3362 = vrot.lane.b32.xlu0 %v3361_v43, %s3472_s30  ;;  %v2925_v43 = vld [vmem:[%s3649_s21 + $0x48] sm:$0xff]  }
  0x30   : > { %3367 = vrot.lane.b32.xlu1 %v3366_v46, %s3472_s30  ;;  %v2680_v46 = vunpack.c.h.bf16 %v2920_v32  ;;  %v2699_v52 = vunpack.c.l.bf16 %v2925_v43  ;;  %v2700_v53 = vunpack.c.h.bf16 %v2925_v43 }
  0x33   : > { %3372 = vrot.lane.b32.xlu0 %v3371_v51, %s3472_s30 }
  0x34   : > { %3377 = vrot.lane.b32.xlu1 %v3376_v54, %s3472_s30  ;;  %v2926_v54 = vld [vmem:[%s3649_s21 + $0x50] sm:$0xff]  }
  0x35   : > { %v2704_v4 = vunpack.c.h.bf16 %v2926_v54 }
  0x37   : > { %3382 = vrot.lane.b32.xlu0 %v3381_v59, %s3472_s30 }
  0x38   : > { %3387 = vrot.lane.b32.xlu1 %v3386_v62, %s3472_s30 }
  0x3b   : > { %3392 = vrot.lane.b32.xlu0 %v3391_v1, %s3472_s30 }
  0x3c   : > { %3397 = vrot.lane.b32.xlu1 %v3396_v2, %s3472_s30  ;;  %v2703_v2 = vunpack.c.l.bf16 %v2926_v54 }
  0x91   : > { %v3323_v8 = vpop.permute.xlu0 %3322 }
  0x92   : > { %v3325_v10 = vunpack.i.h.bf16 %v3323_v8  ;;  %v3324_v11 = vunpack.i.l.bf16 %v3323_v8  ;;  %v3333_v12 = vpop.permute.xlu1 %3332 }
  0x93   : > { %v3334_v17 = vunpack.i.l.bf16 %v3333_v12  ;;  %v3335_v24 = vunpack.i.h.bf16 %v3333_v12 }
  0x94   : > { %v868_v15 = vsel %vm867_vm0, %v2663_v5, %v3324_v11  ;;  %v869_v16 = vsel %vm867_vm0, %v2664_v6, %v3325_v10  ;;  %v2688_v5 = vunpack.c.h.bf16 %v3678_v47  ;;  %v2691_v10 = vunpack.c.l.bf16 %v3690_v61 }
  0x95   : > { %v3328_v20 = vpop.permute.xlu0 %3327  ;;  %3119 = vmatprep.mubr.msk.f32.mxu0 %vm909_vm1, %v868_v15  ;;  %v872_v30 = vsel %vm867_vm0, %v2671_v18, %v3334_v17  ;;  %v873_v35 = vsel %vm867_vm0, %v2672_v25, %v3335_v24  ;;  %v2928_v15 = vld [vmem:[%s3649_s21 + $0x60] sm:$0xff]  }
  0x96   : > { %v3330_v21 = vunpack.i.h.bf16 %v3328_v20  ;;  %v3329_v22 = vunpack.i.l.bf16 %v3328_v20  ;;  %3120 = vmatmul.mubr.msk.f32.vlgmr.msra.gmra.mxu0 %vm909_vm1, %v869_v16  ;;  %v3338_v23 = vpop.permute.xlu1 %3337  ;;  %v1265_v16 = vld [vmem:[%s4194_s6 + $0x10] sm:$0xff] }
  0x97   : > { %v3339_v29 = vunpack.i.l.bf16 %v3338_v23  ;;  %v3340_v34 = vunpack.i.h.bf16 %v3338_v23 }
  0x98   : > { %v870_v27 = vsel %vm867_vm0, %v2667_v13, %v3329_v22  ;;  %v871_v28 = vsel %vm867_vm0, %v2668_v14, %v3330_v21  ;;  %v2708_v14 = vunpack.c.h.bf16 %v2927_v58  ;;  %v2924_v22 = vld [vmem:[%s3649_s21 + $0x40] sm:$0xff]  }
  0x99   : > { %3122 = vmatprep.mubr.msk.f32.mxu0 %vm909_vm1, %v870_v27  ;;  %v3343_v31 = vpop.permute.xlu0 %3342  ;;  %v874_v38 = vsel %vm867_vm0, %v2675_v26, %v3339_v29  ;;  %v875_v45 = vsel %vm867_vm0, %v2676_v36, %v3340_v34  ;;  %v1264_v29 = vld [vmem:[%s4194_s6 + $0x8] sm:$0xff]  ;;  %v2712_v36 = vunpack.c.h.bf16 %v2928_v15 }
  0x9a   : > { %3123 = vmatmul.mubr.msk.f32.gmra.mxu0 %vm909_vm1, %v871_v28  ;;  %v3348_v33 = vpop.permute.xlu1 %3347  ;;  %v3344_v37 = vunpack.i.l.bf16 %v3343_v31  ;;  %v3345_v44 = vunpack.i.h.bf16 %v3343_v31  ;;  %v2711_v28 = vunpack.c.l.bf16 %v2928_v15 }
  0x9b   : > { %3125 = vmatprep.mubr.msk.f32.mxu0 %vm909_vm1, %v872_v30  ;;  %v3349_v48 = vunpack.i.l.bf16 %v3348_v33  ;;  %v3350_v59 = vunpack.i.h.bf16 %v3348_v33  ;;  %v2692_v30 = vunpack.c.h.bf16 %v3690_v61  ;;  %v2929_v33 = vld [vmem:[%s3649_s21 + $0x68] sm:$0xff]  }
  0x9c   : > { %v876_v49 = vsel %vm867_vm0, %v2679_v39, %v3344_v37  ;;  %v877_v60 = vsel %vm867_vm0, %v2680_v46, %v3345_v44  ;;  %v2715_v43 = vunpack.c.l.bf16 %v2929_v33 }
  0x9d   : > { %v3668_v40 = vpop.permute.xlu0 %3352  ;;  %v878_v1 = vsel %vm867_vm0, %v2683_v50, %v3349_v48  ;;  %v879_v18 = vsel %vm867_vm0, %v2684_v55, %v3350_v59  ;;  %v2696_v48 = vunpack.c.h.bf16 %v2924_v22 }
  0x9e   : > { %3126 = vmatmul.mubr.msk.f32.gmra.mxu0 %vm909_vm1, %v873_v35  ;;  %v3672_v42 = vpop.permute.xlu1 %3357  ;;  %v3354_v0 = vunpack.i.l.bf16 %v3668_v40  ;;  %v3355_v17 = vunpack.i.h.bf16 %v3668_v40  ;;  %v2695_v35 = vunpack.c.l.bf16 %v2924_v22 }
  0x9f   : > { %3128 = vmatprep.mubr.msk.f32.mxu0 %vm909_vm1, %v874_v38  ;;  %v3359_v19 = vunpack.i.l.bf16 %v3672_v42 }
  0xa0   : > { %v880_v21 = vsel %vm867_vm0, %v2687_v56, %v3354_v0  ;;  %v881_v34 = vsel %vm867_vm0, %v2688_v5, %v3355_v17 }
  0xa1   : > { %v3681_v51 = vpop.permute.xlu0 %3362  ;;  %v882_v38 = vsel %vm867_vm0, %v2691_v10, %v3359_v19  ;;  %v3770_v10 = vld [vmem:[%s4193_s5] ss:$0 sm:$0xff] }
  0xa2   : > { %3129 = vmatmul.mubr.msk.f32.gmra.mxu0 %vm909_vm1, %v875_v45  ;;  %v3368_v57 = vpop.permute.xlu1 %3367  ;;  %v3364_v37 = vunpack.i.l.bf16 %v3681_v51  ;;  %v2930_v45 = vld [vmem:[%s3649_s21 + $0x70] sm:$0xff]   ;;  %v3365_v46 = vunpack.i.h.bf16 %v3681_v51 }
  0xa3   : > { %3131 = vmatprep.mubr.msk.f32.mxu0 %vm909_vm1, %v876_v49  ;;  %v3370_v62 = vunpack.i.h.bf16 %v3368_v57  ;;  %v3369_v63 = vunpack.i.l.bf16 %v3368_v57  ;;  %v2719_v56 = vunpack.c.l.bf16 %v2930_v45  ;;  %v2931_v57 = vld [vmem:[%s3649_s21 + $0x78] sm:$0xff]   ;;  %v2720_v61 = vunpack.c.h.bf16 %v2930_v45 }
  0xa4   : > { %v884_v49 = vsel %vm867_vm0, %v2695_v35, %v3364_v37  ;;  %v885_v58 = vsel %vm867_vm0, %v2696_v48, %v3365_v46  ;;  %v2723_v0 = vunpack.c.l.bf16 %v2931_v57 }
  0xa5   : > { %v3373_v6 = vpop.permute.xlu0 %3372  ;;  %v886_v7 = vsel %vm867_vm0, %v2699_v52, %v3369_v63  ;;  %v887_v8 = vsel %vm867_vm0, %v2700_v53, %v3370_v62  ;;  %v2716_v53 = vunpack.c.h.bf16 %v2929_v33 }
  0xa6   : > { %3132 = vmatmul.mubr.msk.f32.gmra.mxu0 %vm909_vm1, %v877_v60  ;;  %v3375_v11 = vunpack.i.h.bf16 %v3373_v6  ;;  %v3374_v12 = vunpack.i.l.bf16 %v3373_v6  ;;  %3146 = vmatprep.mubr.msk.f32.mxu1 %vm909_vm1, %v886_v7  ;;  %v3378_v13 = vpop.permute.xlu1 %3377  ;;  %v1263_v7 = vld [vmem:[%s4194_s6] sm:$0xff] }
  0xa7   : > { %3134 = vmatprep.mubr.msk.f32.mxu0 %vm909_vm1, %v878_v1  ;;  %3147 = vmatmul.mubr.msk.f32.vlgmr.msra.gmra.mxu1 %vm909_vm1, %v887_v8  ;;  %v3379_v20 = vunpack.i.l.bf16 %v3378_v13  ;;  %v3380_v23 = vunpack.i.h.bf16 %v3378_v13  ;;  %v1629_v8 = vld [vmem:[%s4196_s8 + $0x8] sm:$0xff] }
  0xa8   : > { %v888_v24 = vsel %vm867_vm0, %v2703_v2, %v3374_v12  ;;  %v889_v25 = vsel %vm867_vm0, %v2704_v4, %v3375_v11  ;;  %3168 = vmatpush3.msra.mxu1 %v3642_v3  ;;  %v3360_v3 = vunpack.i.h.bf16 %v3672_v42  ;;  %v2724_v4 = vunpack.c.h.bf16 %v2931_v57  ;;  %3223 = vmatprep.subr.mxu0 %v1629_v8 }
  0xa9   : > { %3149 = vmatprep.mubr.msk.f32.mxu1 %vm909_vm1, %v888_v24  ;;  %v3383_v26 = vpop.permute.xlu0 %3382  ;;  %v890_v27 = vsel %vm867_vm0, %v2707_v9, %v3379_v20  ;;  %3169 = vmatprep.subr.mxu1 %v1265_v16  ;;  %v891_v40 = vsel %vm867_vm0, %v2708_v14, %v3380_v23  ;;  %v1628_v9 = vld [vmem:[%s4196_s8] sm:$0xff] }
  0xaa   : > { %3135 = vmatmul.mubr.msk.f32.gmra.mxu0 %vm909_vm1, %v879_v18  ;;  %v3384_v31 = vunpack.i.l.bf16 %v3383_v26  ;;  %v3388_v32 = vpop.permute.xlu1 %3387  ;;  %3170 = vmatpush3.msra.mxu1 %v1265_v16  ;;  %v3385_v39 = vunpack.i.h.bf16 %v3383_v26  ;;  %v883_v47 = vsel %vm867_vm0, %v2692_v30, %v3360_v3 }
  0xab   : > { %3137 = vmatprep.mubr.msk.f32.mxu0 %vm909_vm1, %v880_v21  ;;  %3150 = vmatmul.mubr.msk.f32.gmra.mxu1 %vm909_vm1, %v889_v25  ;;  %v3389_v41 = vunpack.i.l.bf16 %v3388_v32  ;;  %v3390_v50 = vunpack.i.h.bf16 %v3388_v32 }
  0xac   : > { %3152 = vmatprep.mubr.msk.f32.mxu1 %vm909_vm1, %v890_v27  ;;  %3171 = vmatprep.subr.mxu1 %v1264_v29  ;;  %v892_v42 = vsel %vm867_vm0, %v2711_v28, %v3384_v31  ;;  %v893_v52 = vsel %vm867_vm0, %v2712_v36, %v3385_v39 }
  0xad   : > { %3172 = vmatpush3.msra.mxu1 %v1264_v29  ;;  %v3393_v44 = vpop.permute.xlu0 %3392  ;;  %v894_v55 = vsel %vm867_vm0, %v2715_v43, %v3389_v41  ;;  %v895_v60 = vsel %vm867_vm0, %v2716_v53, %v3390_v50  ;;  %3224 = vmatpush3.msra.mxu0 %v1629_v8 }
  0xae   : > { %3138 = vmatmul.mubr.msk.f32.gmra.mxu0 %vm909_vm1, %v881_v34  ;;  %v3394_v54 = vunpack.i.l.bf16 %v3393_v44  ;;  %v3398_v51 = vpop.permute.xlu1 %3397  ;;  %v3395_v59 = vunpack.i.h.bf16 %v3393_v44  ;;  %3173 = vmatprep.subr.mxu1 %v1263_v7 }
  0xaf   : > { %3140 = vmatprep.mubr.msk.f32.mxu0 %vm909_vm1, %v882_v38  ;;  %3153 = vmatmul.mubr.msk.f32.gmra.mxu1 %vm909_vm1, %v891_v40  ;;  %v3399_v62 = vunpack.i.l.bf16 %v3398_v51  ;;  %v3400_v1 = vunpack.i.h.bf16 %v3398_v51 }
  0xb0   : > { %3155 = vmatprep.mubr.msk.f32.mxu1 %vm909_vm1, %v892_v42  ;;  %v896_v63 = vsel %vm867_vm0, %v2719_v56, %v3394_v54  ;;  %v897_v2 = vsel %vm867_vm0, %v2720_v61, %v3395_v59  ;;  %3174 = vmatpush3.msra.mxu1 %v1263_v7 }
  0xb1   : > { %v898_v5 = vsel %vm867_vm0, %v2723_v0, %v3399_v62  ;;  %v899_v6 = vsel %vm867_vm0, %v2724_v4, %v3400_v1  ;;  %3225 = vmatprep.subr.mxu0 %v1628_v9 }
  0xb2   : > { %3141 = vmatmul.mubr.msk.f32.gmra.mxu0 %vm909_vm1, %v883_v47 }
  0xb3   : > { %3143 = vmatprep.mubr.msk.f32.mxu0 %vm909_vm1, %v884_v49  ;;  %3156 = vmatmul.mubr.msk.f32.gmra.mxu1 %vm909_vm1, %v893_v52 }
  0xb4   : > { %3158 = vmatprep.mubr.msk.f32.mxu1 %vm909_vm1, %v894_v55  ;;  %3226 = vmatpush3.msra.mxu0 %v1628_v9 }
  0xb6   : > { %3144 = vmatmul.mubr.msk.f32.gmra.mxu0 %vm909_vm1, %v885_v58 }
  0xb7   : > { %3159 = vmatmul.mubr.msk.f32.gmra.mxu1 %vm909_vm1, %v895_v60 }
  0xb8   : > { %3161 = vmatprep.mubr.msk.f32.mxu1 %vm909_vm1, %v896_v63 }
  0xbb   : > { %3162 = vmatmul.mubr.msk.f32.gmra.mxu1 %vm909_vm1, %v897_v2 }
  0xbc   : > { %3164 = vmatprep.mubr.msk.f32.mxu1 %vm909_vm1, %v898_v5 }
  0xbf   : > { %3165 = vmatmul.mubr.msk.f32.gmra.mxu1 %vm909_vm1, %v899_v6 }
 0x156   : > { %v3121_v11 = vpop.f32.mrf.mxu0 }
 0x157   : > { %v1078_v12 = vadd.f32 %v3121_v11, %v3770_v10 }
 0x158   : > { %v1072_v13 = vpop.f32.mrf.mxu0 }
 0x159   : > { %v1073_v14 = vadd.f32 %v3770_v10, %v1072_v13  ;;  %v1232_v17 = vmax.f32 %v1078_v12, 0.0 }
 0x15a   : > { %v3124_v15 = vpop.f32.mrf.mxu0 }
 0x15b   : > { %v1231_v16 = vmax.f32 %v1073_v14, 0.0  ;;  %v1088_v18 = vadd.f32 %v3124_v15, %v3770_v10 }
 0x15c   : > { %v1082_v19 = vpop.f32.mrf.mxu0 }
 0x15d   : > { %v1083_v20 = vadd.f32 %v3770_v10, %v1082_v19  ;;  %3175 = vmatprep.mubr.msk.f32.mxu1 %vm1274_vm2, %v1231_v16  ;;  %v1234_v23 = vmax.f32 %v1088_v18, 0.0 }
 0x15e   : > { %v3127_v21 = vpop.f32.mrf.mxu0  ;;  %3176 = vmatmul.mubr.msk.f32.vlgmr.msra.gmra.mxu1 %vm1274_vm2, %v1232_v17 }
 0x15f   : > { %v1233_v22 = vmax.f32 %v1083_v20, 0.0  ;;  %v1098_v24 = vadd.f32 %v3127_v21, %v3770_v10 }
 0x160   : > { %v1092_v25 = vpop.f32.mrf.mxu0 }
 0x161   : > { %v1093_v26 = vadd.f32 %v3770_v10, %v1092_v25  ;;  %3178 = vmatprep.mubr.msk.f32.mxu1 %vm1274_vm2, %v1233_v22  ;;  %v1236_v29 = vmax.f32 %v1098_v24, 0.0 }
 0x162   : > { %v3130_v27 = vpop.f32.mrf.mxu0  ;;  %3179 = vmatmul.mubr.msk.f32.gmra.mxu1 %vm1274_vm2, %v1234_v23 }
 0x163   : > { %v1235_v28 = vmax.f32 %v1093_v26, 0.0  ;;  %v1108_v30 = vadd.f32 %v3130_v27, %v3770_v10 }
 0x164   : > { %v1102_v31 = vpop.f32.mrf.mxu0 }
 0x165   : > { %v1103_v32 = vadd.f32 %v3770_v10, %v1102_v31  ;;  %3181 = vmatprep.mubr.msk.f32.mxu1 %vm1274_vm2, %v1235_v28  ;;  %v1238_v35 = vmax.f32 %v1108_v30, 0.0 }
 0x166   : > { %v3133_v33 = vpop.f32.mrf.mxu0  ;;  %3182 = vmatmul.mubr.msk.f32.gmra.mxu1 %vm1274_vm2, %v1236_v29 }
 0x167   : > { %v1237_v3 = vmax.f32 %v1103_v32, 0.0  ;;  %v3148_v34 = vpop.f32.mrf.mxu1  ;;  %v1118_v36 = vadd.f32 %v3133_v33, %v3770_v10 }
 0x168   : > { %v1112_v37 = vpop.f32.mrf.mxu0  ;;  %v1168_v14 = vadd.f32 %v3148_v34, %v3770_v10 }
 0x169   : > { %v1113_v38 = vadd.f32 %v3770_v10, %v1112_v37  ;;  %3184 = vmatprep.mubr.msk.f32.mxu1 %vm1274_vm2, %v1237_v3  ;;  %v1162_v39 = vpop.f32.mrf.mxu1  ;;  %v1240_v43 = vmax.f32 %v1118_v36, 0.0 }
 0x16a   : > { %v3136_v40 = vpop.f32.mrf.mxu0  ;;  %3185 = vmatmul.mubr.msk.f32.gmra.mxu1 %vm1274_vm2, %v1238_v35  ;;  %v1163_v2 = vadd.f32 %v3770_v10, %v1162_v39  ;;  %v1250_v18 = vmax.f32 %v1168_v14, 0.0  ;;  %v2961_v14 = vld [vmem:[%s3840_s20 + $0x78] sm:$0xff]  }
 0x16b   : > { %v1239_v41 = vmax.f32 %v1113_v38, 0.0  ;;  %v3151_v42 = vpop.f32.mrf.mxu1  ;;  %v1128_v44 = vadd.f32 %v3136_v40, %v3770_v10 }
 0x16c   : > { %v1122_v45 = vpop.f32.mrf.mxu0  ;;  %v1249_v11 = vmax.f32 %v1163_v2, 0.0  ;;  %v1178_v19 = vadd.f32 %v3151_v42, %v3770_v10  ;;  %v2950_v2 = vld [vmem:[%s3840_s20 + $0x20] sm:$0xff]  }
 0x16d   : > { %v1123_v46 = vadd.f32 %v3770_v10, %v1122_v45  ;;  %3187 = vmatprep.mubr.msk.f32.mxu1 %vm1274_vm2, %v1239_v41  ;;  %v1172_v47 = vpop.f32.mrf.mxu1  ;;  %v1242_v52 = vmax.f32 %v1128_v44, 0.0 }
 0x16e   : > { %v3139_v48 = vpop.f32.mrf.mxu0  ;;  %3188 = vmatmul.mubr.msk.f32.gmra.mxu1 %vm1274_vm2, %v1240_v43  ;;  %v1173_v12 = vadd.f32 %v3770_v10, %v1172_v47  ;;  %v1252_v23 = vmax.f32 %v1178_v19, 0.0  ;;  %v2968_v43 = vld [vmem:[%s3846_s27 + $0x38] sm:$0xff]  }
 0x16f   : > { %v1241_v49 = vmax.f32 %v1123_v46, 0.0  ;;  %v3154_v50 = vpop.f32.mrf.mxu1  ;;  %v1138_v53 = vadd.f32 %v3139_v48, %v3770_v10  ;;  %v2884_v45 = vunpack.c.h.bf16 %v2968_v43  ;;  %v2883_v48 = vunpack.c.l.bf16 %v2968_v43 }
 0x170   : > { %v1132_v54 = vpop.f32.mrf.mxu0  ;;  %v1251_v16 = vmax.f32 %v1173_v12, 0.0  ;;  %v1188_v24 = vadd.f32 %v3154_v50, %v3770_v10  ;;  %v2952_v50 = vld [vmem:[%s3840_s20 + $0x30] sm:$0xff]   ;;  %v2949_v12 = vld [vmem:[%s3840_s20 + $0x18] sm:$0xff]  }
 0x171   : > { %v1133_v55 = vadd.f32 %v3770_v10, %v1132_v54  ;;  %3190 = vmatprep.mubr.msk.f32.mxu1 %vm1274_vm2, %v1241_v49  ;;  %v1182_v56 = vpop.f32.mrf.mxu1  ;;  %v1244_v59 = vmax.f32 %v1138_v53, 0.0  ;;  %v2816_v53 = vunpack.c.h.bf16 %v2952_v50 }
 0x172   : > { %v3142_v51 = vpop.f32.mrf.mxu0  ;;  %3191 = vmatmul.mubr.msk.f32.gmra.mxu1 %vm1274_vm2, %v1242_v52  ;;  %v1183_v17 = vadd.f32 %v3770_v10, %v1182_v56  ;;  %v1254_v28 = vmax.f32 %v1188_v24, 0.0  ;;  %v2967_v52 = vld [vmem:[%s3846_s27 + $0x30] sm:$0xff]   ;;  %v2815_v56 = vunpack.c.l.bf16 %v2952_v50  ;;  %v2851_v24 = vunpack.c.l.bf16 %v2961_v14 }
 0x173   : > { %v1243_v57 = vmax.f32 %v1133_v55, 0.0  ;;  %v3157_v58 = vpop.f32.mrf.mxu1  ;;  %v1148_v60 = vadd.f32 %v3142_v51, %v3770_v10  ;;  %v2880_v54 = vunpack.c.h.bf16 %v2967_v52  ;;  %v2879_v51 = vunpack.c.l.bf16 %v2967_v52  ;;  %v2790_v52 = vld [vmem:[%s3840_s20] sm:$0xff]  }
 0x174   : > { %v1142_v61 = vpop.f32.mrf.mxu0  ;;  %v1253_v21 = vmax.f32 %v1183_v17, 0.0  ;;  %v1198_v29 = vadd.f32 %v3157_v58, %v3770_v10  ;;  %v2951_v58 = vld [vmem:[%s3840_s20 + $0x28] sm:$0xff]   ;;  %v2852_v17 = vunpack.c.h.bf16 %v2961_v14  ;;  %v2954_v14 = vld [vmem:[%s3840_s20 + $0x40] sm:$0xff]  }
 0x175   : > { %v1143_v62 = vadd.f32 %v3770_v10, %v1142_v61  ;;  %3193 = vmatprep.mubr.msk.f32.mxu1 %vm1274_vm2, %v1243_v57  ;;  %v1192_v63 = vpop.f32.mrf.mxu1  ;;  %v1246_v4 = vmax.f32 %v1148_v60, 0.0  ;;  %v2003_v55 = vmul.f32 %v2880_v54, %v2816_v53  ;;  %v2002_v57 = vmul.f32 %v2879_v51, %v2815_v56  ;;  %v2854_v53 = vld [vmem:[%s3846_s27] sm:$0xff]   ;;  %v2957_v56 = vld [vmem:[%s3840_s20 + $0x58] sm:$0xff]  }
 0x176   : > { %v3145_v0 = vpop.f32.mrf.mxu0  ;;  %3194 = vmatmul.mubr.msk.f32.gmra.mxu1 %vm1274_vm2, %v1244_v59  ;;  %v1193_v22 = vadd.f32 %v3770_v10, %v1192_v63  ;;  %v1256_v33 = vmax.f32 %v1198_v29, 0.0  ;;  %v2966_v59 = vld [vmem:[%s3846_s27 + $0x28] sm:$0xff]   ;;  %v2812_v60 = vunpack.c.h.bf16 %v2951_v58  ;;  %v2811_v63 = vunpack.c.l.bf16 %v2951_v58  ;;  %v2963_v29 = vld [vmem:[%s3846_s27 + $0x10] sm:$0xff]   ;;  %v2972_v51 = vld [vmem:[%s3846_s27 + $0x58] sm:$0xff]  }
 0x177   : > { %v1245_v1 = vmax.f32 %v1143_v62, 0.0  ;;  %v1158_v5 = vadd.f32 %v3145_v0, %v3770_v10  ;;  %v3160_v7 = vpop.f32.mrf.mxu1  ;;  %v2876_v61 = vunpack.c.h.bf16 %v2966_v59  ;;  %v2875_v0 = vunpack.c.l.bf16 %v2966_v59  ;;  %v2973_v59 = vld [vmem:[%s3846_s27 + $0x60] sm:$0xff]  }
 0x178   : > { %v1152_v6 = vpop.f32.mrf.mxu0  ;;  %v1255_v26 = vmax.f32 %v1193_v22, 0.0  ;;  %v1208_v3 = vadd.f32 %v3160_v7, %v3770_v10  ;;  %v2803_v22 = vunpack.c.l.bf16 %v2949_v12 }
 0x179   : > { %v1153_v8 = vadd.f32 %v3770_v10, %v1152_v6  ;;  %3196 = vmatprep.mubr.msk.f32.mxu1 %vm1274_vm2, %v1245_v1  ;;  %v1248_v13 = vmax.f32 %v1158_v5, 0.0  ;;  %v1202_v15 = vpop.f32.mrf.mxu1  ;;  %v2001_v62 = vmul.f32 %v2876_v61, %v2812_v60  ;;  %v2000_v1 = vmul.f32 %v2875_v0, %v2811_v63  ;;  %v2956_v60 = vld [vmem:[%s3840_s20 + $0x50] sm:$0xff]  }
 0x17a   : > { %3197 = vmatmul.mubr.msk.f32.gmra.mxu1 %vm1274_vm2, %v1246_v4  ;;  %v1203_v27 = vadd.f32 %v3770_v10, %v1202_v15  ;;  %v1258_v37 = vmax.f32 %v1208_v3, 0.0  ;;  %v2965_v4 = vld [vmem:[%s3846_s27 + $0x20] sm:$0xff]   ;;  %v2808_v5 = vunpack.c.h.bf16 %v2950_v2  ;;  %v2804_v15 = vunpack.c.h.bf16 %v2949_v12  ;;  %v2975_v3 = vld [vmem:[%s3846_s27 + $0x70] sm:$0xff]  }
 0x17b   : > { %v1247_v9 = vmax.f32 %v1153_v8, 0.0  ;;  %v3163_v20 = vpop.f32.mrf.mxu1  ;;  %v2872_v6 = vunpack.c.h.bf16 %v2965_v4  ;;  %v2807_v8 = vunpack.c.l.bf16 %v2950_v2  ;;  %v2792_v63 = vunpack.c.h.bf16 %v2790_v52 }
 0x17c   : > { %v1257_v31 = vmax.f32 %v1203_v27, 0.0  ;;  %v1218_v38 = vadd.f32 %v3163_v20, %v3770_v10  ;;  %v2856_v0 = vunpack.c.h.bf16 %v2854_v53  ;;  %v2899_v12 = vunpack.c.l.bf16 %v2972_v51 }
 0x17d   : > { %3199 = vmatprep.mubr.msk.f32.mxu1 %vm1274_vm2, %v1247_v9  ;;  %v1212_v25 = vpop.f32.mrf.mxu1  ;;  %v1999_v7 = vmul.f32 %v2872_v6, %v2808_v5  ;;  %v2871_v9 = vunpack.c.l.bf16 %v2965_v4  ;;  %v2836_v5 = vunpack.c.h.bf16 %v2957_v56  ;;  %v2900_v6 = vunpack.c.h.bf16 %v2972_v51 }
 0x17e   : > { %3200 = vmatmul.mubr.msk.f32.gmra.mxu1 %vm1274_vm2, %v1248_v13  ;;  %v1213_v32 = vadd.f32 %v3770_v10, %v1212_v25  ;;  %v1260_v40 = vmax.f32 %v1218_v38, 0.0  ;;  %v2964_v13 = vld [vmem:[%s3846_s27 + $0x18] sm:$0xff]   ;;  %v2863_v38 = vunpack.c.l.bf16 %v2963_v29 }
 0x17f   : > { %3202 = vmatprep.mubr.msk.f32.mxu1 %vm1274_vm2, %v1249_v11  ;;  %v3166_v30 = vpop.f32.mrf.mxu1  ;;  %v1998_v11 = vmul.f32 %v2871_v9, %v2807_v8  ;;  %v2970_v8 = vld [vmem:[%s3846_s27 + $0x48] sm:$0xff]   ;;  %v2904_v9 = vunpack.c.h.bf16 %v2973_v59 }
 0x180   : > { %v1259_v35 = vmax.f32 %v1213_v32, 0.0  ;;  %v1228_v41 = vadd.f32 %v3166_v30, %v3770_v10  ;;  %v2960_v30 = vld [vmem:[%s3840_s20 + $0x70] sm:$0xff]   ;;  %v2864_v32 = vunpack.c.h.bf16 %v2963_v29 }
 0x181   : > { %v1222_v34 = vpop.f32.mrf.mxu1 }
 0x182   : > { %3203 = vmatmul.mubr.msk.f32.gmra.mxu1 %vm1274_vm2, %v1250_v18  ;;  %v1223_v36 = vadd.f32 %v3770_v10, %v1222_v34  ;;  %v1262_v42 = vmax.f32 %v1228_v41, 0.0  ;;  %v2953_v10 = vld [vmem:[%s3840_s20 + $0x38] sm:$0xff]   ;;  %v2959_v41 = vld [vmem:[%s3840_s20 + $0x68] sm:$0xff]  }
 0x183   : > { %3205 = vmatprep.mubr.msk.f32.mxu1 %vm1274_vm2, %v1251_v16  ;;  %v2820_v44 = vunpack.c.h.bf16 %v2953_v10  ;;  %v2819_v47 = vunpack.c.l.bf16 %v2953_v10  ;;  %v2868_v16 = vunpack.c.h.bf16 %v2964_v13  ;;  %v2976_v18 = vld [vmem:[%s3846_s27 + $0x78] sm:$0xff]  }
 0x184   : > { %v1261_v39 = vmax.f32 %v1223_v36, 0.0  ;;  %v2916_v19 = vunpack.c.h.bf16 %v2976_v18  ;;  %v2915_v25 = vunpack.c.l.bf16 %v2976_v18  ;;  %v2962_v36 = vld [vmem:[%s3846_s27 + $0x8] sm:$0xff]   ;;  %v2831_v18 = vunpack.c.l.bf16 %v2956_v60 }
 0x185   : > { %v2005_v46 = vmul.f32 %v2884_v45, %v2820_v44  ;;  %v2004_v49 = vmul.f32 %v2883_v48, %v2819_v47  ;;  %v1997_v20 = vmul.f32 %v2868_v16, %v2804_v15  ;;  %v2860_v45 = vunpack.c.h.bf16 %v2962_v36 }
 0x186   : > { %3206 = vmatmul.mubr.msk.f32.gmra.mxu1 %vm1274_vm2, %v1252_v23  ;;  %v2867_v23 = vunpack.c.l.bf16 %v2964_v13  ;;  %v2020_v27 = vmul.f32 %v2915_v25, %v2851_v24  ;;  %v2859_v50 = vunpack.c.l.bf16 %v2962_v36  ;;  %v2832_v13 = vunpack.c.h.bf16 %v2956_v60 }
 0x187   : > { %3208 = vmatprep.mubr.msk.f32.mxu1 %vm1274_vm2, %v1253_v21  ;;  %2084 = vrot.lane.b32.xlu1 %v2005_v46, %s3472_s30  ;;  %v2021_v21 = vmul.f32 %v2916_v19, %v2852_v17  ;;  %v2844_v46 = vunpack.c.h.bf16 %v2959_v41  ;;  %v2013_v16 = vmul.f32 %v2900_v6, %v2836_v5  ;;  %v2969_v19 = vld [vmem:[%s3846_s27 + $0x40] sm:$0xff]   ;;  %v2855_v36 = vunpack.c.l.bf16 %v2854_v53 }
 0x189   : > { %2116 = vrot.lane.b32.xlu0 %v2021_v21, %s3472_s30 }
 0x18a   : > { %3209 = vmatmul.mubr.msk.f32.gmra.mxu1 %vm1274_vm2, %v1254_v28  ;;  %v2948_v28 = vld [vmem:[%s3840_s20 + $0x10] sm:$0xff]  }
 0x18b   : > { %3211 = vmatprep.mubr.msk.f32.mxu1 %vm1274_vm2, %v1255_v26  ;;  %2082 = vrot.lane.b32.xlu1 %v2004_v49, %s3472_s30  ;;  %v1996_v26 = vmul.f32 %v2867_v23, %v2803_v22  ;;  %v2799_v34 = vunpack.c.l.bf16 %v2948_v28  ;;  %v2892_v23 = vunpack.c.h.bf16 %v2970_v8 }
 0x18d   : > { %2114 = vrot.lane.b32.xlu0 %v2020_v27, %s3472_s30  ;;  %v1994_v48 = vmul.f32 %v2863_v38, %v2799_v34  ;;  %v2824_v27 = vunpack.c.h.bf16 %v2954_v14  ;;  %v1991_v34 = vmul.f32 %v2856_v0, %v2792_v63 }
 0x18e   : > { %3212 = vmatmul.mubr.msk.f32.gmra.mxu1 %vm1274_vm2, %v1256_v33  ;;  %v2848_v33 = vunpack.c.h.bf16 %v2960_v30 }
 0x18f   : > { %3214 = vmatprep.mubr.msk.f32.mxu1 %vm1274_vm2, %v1257_v31  ;;  %2080 = vrot.lane.b32.xlu1 %v2003_v55, %s3472_s30  ;;  %v2800_v31 = vunpack.c.h.bf16 %v2948_v28  ;;  %v2958_v55 = vld [vmem:[%s3840_s20 + $0x60] sm:$0xff]  }
 0x190   : > { %v2840_v4 = vunpack.c.h.bf16 %v2958_v55 }
 0x191   : > { %v1995_v10 = vmul.f32 %v2864_v32, %v2800_v31  ;;  %v2823_v31 = vunpack.c.l.bf16 %v2954_v14 }
 0x192   : > { %3215 = vmatmul.mubr.msk.f32.gmra.mxu1 %vm1274_vm2, %v1258_v37  ;;  %v2912_v37 = vunpack.c.h.bf16 %v2975_v3  ;;  %v2015_v38 = vmul.f32 %v2904_v9, %v2840_v4 }
 0x193   : > { %3217 = vmatprep.mubr.msk.f32.mxu1 %vm1274_vm2, %v1259_v35  ;;  %2078 = vrot.lane.b32.xlu1 %v2002_v57, %s3472_s30  ;;  %v2947_v35 = vld [vmem:[%s3840_s20 + $0x8] sm:$0xff]   ;;  %v2843_v57 = vunpack.c.l.bf16 %v2959_v41 }
 0x194   : > { %v2796_v43 = vunpack.c.h.bf16 %v2947_v35  ;;  %v2019_v44 = vmul.f32 %v2912_v37, %v2848_v33  ;;  %v2795_v49 = vunpack.c.l.bf16 %v2947_v35  ;;  %v2887_v33 = vunpack.c.l.bf16 %v2969_v19 }
 0x195   : > { %v2791_v35 = vunpack.c.l.bf16 %v2790_v52 }
 0x196   : > { %3218 = vmatmul.mubr.msk.f32.gmra.mxu1 %vm1274_vm2, %v1260_v40  ;;  %v2911_v40 = vunpack.c.l.bf16 %v2975_v3  ;;  %2112 = vrot.lane.b32.xlu0 %v2019_v44, %s3472_s30  ;;  %v1993_v61 = vmul.f32 %v2860_v45, %v2796_v43  ;;  %v1992_v2 = vmul.f32 %v2859_v50, %v2795_v49  ;;  %v2006_v37 = vmul.f32 %v2887_v33, %v2823_v31 }
 0x197   : > { %3220 = vmatprep.mubr.msk.f32.mxu1 %vm1274_vm2, %v1261_v39  ;;  %2076 = vrot.lane.b32.xlu1 %v2001_v62, %s3472_s30  ;;  %v2847_v39 = vunpack.c.l.bf16 %v2960_v30  ;;  %v2888_v30 = vunpack.c.h.bf16 %v2969_v19  ;;  %v1990_v41 = vmul.f32 %v2855_v36, %v2791_v35 }
 0x199   : > { %v2018_v54 = vmul.f32 %v2911_v40, %v2847_v39  ;;  %v2007_v3 = vmul.f32 %v2888_v30, %v2824_v27  ;;  %v2839_v39 = vunpack.c.l.bf16 %v2958_v55  ;;  %v2903_v40 = vunpack.c.l.bf16 %v2973_v59 }
 0x19a   : > { %3221 = vmatmul.mubr.msk.f32.gmra.mxu1 %vm1274_vm2, %v1262_v42  ;;  %v2974_v42 = vld [vmem:[%s3846_s27 + $0x68] sm:$0xff]  }
 0x19b   : > { %2074 = vrot.lane.b32.xlu1 %v2000_v1, %s3472_s30  ;;  %v2908_v47 = vunpack.c.h.bf16 %v2974_v42  ;;  %v2907_v58 = vunpack.c.l.bf16 %v2974_v42  ;;  %v2971_v1 = vld [vmem:[%s3846_s27 + $0x50] sm:$0xff]   ;;  %2110 = vrot.lane.b32.xlu0 %v2018_v54, %s3472_s30  ;;  %v2014_v42 = vmul.f32 %v2903_v40, %v2839_v39 }
 0x19c   : > { %v2896_v17 = vunpack.c.h.bf16 %v2971_v1  ;;  %v2895_v21 = vunpack.c.l.bf16 %v2971_v1 }
 0x19d   : > { %v2017_v62 = vmul.f32 %v2908_v47, %v2844_v46  ;;  %v2016_v15 = vmul.f32 %v2907_v58, %v2843_v57 }
 0x19e   : > { %v2011_v24 = vmul.f32 %v2896_v17, %v2832_v13  ;;  %v2010_v28 = vmul.f32 %v2895_v21, %v2831_v18 }
 0x19f   : > { %2072 = vrot.lane.b32.xlu1 %v1999_v7, %s3472_s30  ;;  %v2955_v7 = vld [vmem:[%s3840_s20 + $0x48] sm:$0xff]   ;;  %2108 = vrot.lane.b32.xlu0 %v2017_v62, %s3472_s30  ;;  %s455_s20 = sand.u32 1, %s3462_s24  }
 0x1a0   : > { %v2828_v22 = vunpack.c.h.bf16 %v2955_v7  ;;  %v2827_v25 = vunpack.c.l.bf16 %v2955_v7  ;;  %s2512_s21 = sshll.u32 %s455_s20, 1  ;;  %s2399_s17 = scalar_lea.sflag [#allocation4], %s455_s20 }
 0x1a1   : > { %s457_s11 = scalar_lea.vmem [#allocation3], %s2512_s21  ;;  %s3416_s21 = scalar_lea.vmem %s3415_s0, 64 }
 0x1a2   : > { %v2009_v29 = vmul.f32 %v2892_v23, %v2828_v22  ;;  %s2413_s27 = sshll.u32 %s457_s11, 4  ;;  %s2414_s27 = int_to_ptr.vmem [resolvable:$true] %s2413_s27 }
 0x1a3   : > { %2070 = vrot.lane.b32.xlu1 %v1998_v11, %s3472_s30  ;;  %v2835_v11 = vunpack.c.l.bf16 %v2957_v56  ;;  %2106 = vrot.lane.b32.xlu0 %v2016_v15, %s3472_s30  ;;  %s3410_s18 = scalar_lea.vmem %s2414_s27, 32  ;;  %p3417_p0 = scmp.lt.s32.totalorder %s2414_s27, %s3415_s0 }
 0x1a4   : > { %p3411_p11 = scmp.ne.s32.totalorder %s2414_s27, %s3410_s18  ;;  %p3418_p1 = scmp.lt.s32.totalorder %s3416_s21, %s3410_s18 }
 0x1a6   : > { %p3412_p12 = pnand %p3411_p11, %p3579_p5  ;;  %p3419_p2 = por %p3418_p1, %p3417_p0 }
 0x1a7   : > { %2068 = vrot.lane.b32.xlu1 %v1997_v20, %s3472_s30  ;;  %v2012_v20 = vmul.f32 %v2899_v12, %v2835_v11  ;;  %2104 = vrot.lane.b32.xlu0 %v2015_v38, %s3472_s30 }
 0x1a8   : > { %p3413_p13 = pneg %p3412_p12 }
 0x1aa   : > { %p3420_p3 = pnand %p3419_p2, %p3413_p13 }
 0x1ab   : > { %2066 = vrot.lane.b32.xlu1 %v1996_v26, %s3472_s30  ;;  %v2891_v26 = vunpack.c.l.bf16 %v2970_v8  ;;  %2102 = vrot.lane.b32.xlu0 %v2014_v42, %s3472_s30 }
 0x1ad   : > { %v2008_v32 = vmul.f32 %v2891_v26, %v2827_v25 }
 0x1af   : > { %2064 = vrot.lane.b32.xlu1 %v1995_v10, %s3472_s30  ;;  %2100 = vrot.lane.b32.xlu0 %v2013_v16, %s3472_s30  ;;  %v3915_v10 = vld [vmem:[%s4195_s7] ss:$0 sm:$0xff] }
 0x1b3   : > { %2062 = vrot.lane.b32.xlu1 %v1994_v48, %s3472_s30  ;;  %2098 = vrot.lane.b32.xlu0 %v2012_v20, %s3472_s30 }
 0x1b7   : > { %2060 = vrot.lane.b32.xlu1 %v1993_v61, %s3472_s30  ;;  %2096 = vrot.lane.b32.xlu0 %v2011_v24, %s3472_s30 }
 0x1bb   : > { %2058 = vrot.lane.b32.xlu1 %v1992_v2, %s3472_s30  ;;  %2094 = vrot.lane.b32.xlu0 %v2010_v28, %s3472_s30 }
 0x1bf   : > { %2056 = vrot.lane.b32.xlu1 %v1991_v34, %s3472_s30  ;;  %2092 = vrot.lane.b32.xlu0 %v2009_v29, %s3472_s30 }
 0x1c3   : > { %2054 = vrot.lane.b32.xlu1 %v1990_v41, %s3472_s30  ;;  %2090 = vrot.lane.b32.xlu0 %v2008_v32, %s3472_s30 }
 0x1c7   : > { %2088 = vrot.lane.b32.xlu0 %v2007_v3, %s3472_s30 }
 0x1cb   : > { %2086 = vrot.lane.b32.xlu0 %v2006_v37, %s3472_s30  ;;  %s2411_s30 = scalar_lea.hbm %s4200_s12, %s3589_s16 }
 0x21e   : > { %v3177_v43 = vpop.f32.mrf.mxu1 }
 0x21f   : > { %v1443_v44 = vadd.f32 %v3177_v43, %v3915_v10 }
 0x220   : > { %v1437_v45 = vpop.f32.mrf.mxu1 }
 0x221   : > { %v1438_v46 = vadd.f32 %v3915_v10, %v1437_v45  ;;  %v1597_v49 = vmax.f32 %v1443_v44, 0.0 }
 0x222   : > { %v3180_v47 = vpop.f32.mrf.mxu1 }
 0x223   : > { %v1596_v48 = vmax.f32 %v1438_v46, 0.0  ;;  %v1453_v50 = vadd.f32 %v3180_v47, %v3915_v10 }
 0x224   : > { %v1447_v52 = vpop.f32.mrf.mxu1 }
 0x225   : > { %v1448_v53 = vadd.f32 %v3915_v10, %v1447_v52  ;;  %3227 = vmatprep.mubr.msk.f32.mxu0 %vm909_vm1, %v1596_v48  ;;  %v1599_v56 = vmax.f32 %v1453_v50, 0.0 }
 0x226   : > { %v3183_v54 = vpop.f32.mrf.mxu1  ;;  %3228 = vmatmul.mubr.msk.f32.vlgmr.msra.gmra.mxu0 %vm909_vm1, %v1597_v49 }
 0x227   : > { %v1598_v55 = vmax.f32 %v1448_v53, 0.0  ;;  %v1463_v51 = vadd.f32 %v3183_v54, %v3915_v10 }
 0x228   : > { %v1457_v57 = vpop.f32.mrf.mxu1 }
 0x229   : > { %v1458_v58 = vadd.f32 %v3915_v10, %v1457_v57  ;;  %3230 = vmatprep.mubr.msk.f32.mxu0 %vm909_vm1, %v1598_v55  ;;  %v1601_v61 = vmax.f32 %v1463_v51, 0.0 }
 0x22a   : > { %v3186_v59 = vpop.f32.mrf.mxu1  ;;  %3231 = vmatmul.mubr.msk.f32.gmra.mxu0 %vm909_vm1, %v1599_v56 }
 0x22b   : > { %v1600_v60 = vmax.f32 %v1458_v58, 0.0  ;;  %v1473_v62 = vadd.f32 %v3186_v59, %v3915_v10 }
 0x22c   : > { %v1467_v63 = vpop.f32.mrf.mxu1 }
 0x22d   : > { %v1468_v0 = vadd.f32 %v3915_v10, %v1467_v63  ;;  %3233 = vmatprep.mubr.msk.f32.mxu0 %vm909_vm1, %v1600_v60  ;;  %v1603_v4 = vmax.f32 %v1473_v62, 0.0 }
 0x22e   : > { %v3189_v1 = vpop.f32.mrf.mxu1  ;;  %3234 = vmatmul.mubr.msk.f32.gmra.mxu0 %vm909_vm1, %v1601_v61 }
 0x22f   : > { %v1602_v2 = vmax.f32 %v1468_v0, 0.0  ;;  %v1483_v5 = vadd.f32 %v3189_v1, %v3915_v10 }
 0x230   : > { %v1477_v6 = vpop.f32.mrf.mxu1 }
 0x231   : > { %v1478_v7 = vadd.f32 %v3915_v10, %v1477_v6  ;;  %3236 = vmatprep.mubr.msk.f32.mxu0 %vm909_vm1, %v1602_v2  ;;  %v1605_v11 = vmax.f32 %v1483_v5, 0.0 }
 0x232   : > { %v3192_v8 = vpop.f32.mrf.mxu1  ;;  %3237 = vmatmul.mubr.msk.f32.gmra.mxu0 %vm909_vm1, %v1603_v4 }
 0x233   : > { %v1604_v9 = vmax.f32 %v1478_v7, 0.0  ;;  %v1493_v12 = vadd.f32 %v3192_v8, %v3915_v10 }
 0x234   : > { %v1487_v13 = vpop.f32.mrf.mxu1 }
 0x235   : > { %v1488_v14 = vadd.f32 %v3915_v10, %v1487_v13  ;;  %3239 = vmatprep.mubr.msk.f32.mxu0 %vm909_vm1, %v1604_v9  ;;  %v1607_v17 = vmax.f32 %v1493_v12, 0.0 }
 0x236   : > { %v3195_v15 = vpop.f32.mrf.mxu1  ;;  %3240 = vmatmul.mubr.msk.f32.gmra.mxu0 %vm909_vm1, %v1605_v11 }
 0x237   : > { %v1606_v16 = vmax.f32 %v1488_v14, 0.0  ;;  %v1503_v18 = vadd.f32 %v3195_v15, %v3915_v10  ;;  %v3984_v14 = vld [vmem:[%s4198_s10] sm:$0x1] }
 0x238   : > { %v1497_v19 = vpop.f32.mrf.mxu1  ;;  %3113 = vmatprep.mubr.msk.f32.mxu1 %vm909_vm1, %v3984_v14 }
 0x239   : > { %v1498_v20 = vadd.f32 %v3915_v10, %v1497_v19  ;;  %3242 = vmatprep.mubr.msk.f32.mxu0 %vm909_vm1, %v1606_v16  ;;  %v1609_v23 = vmax.f32 %v1503_v18, 0.0  ;;  %v2183_v16 = vld [vmem:[#allocation2] sm:$0x1] }
 0x23a   : > { %v3198_v21 = vpop.f32.mrf.mxu1  ;;  %3243 = vmatmul.mubr.msk.f32.gmra.mxu0 %vm909_vm1, %v1607_v17  ;;  %v3473_v17 = vmov 0  }
 0x23b   : > { %v1608_v22 = vmax.f32 %v1498_v20, 0.0  ;;  %v1513_v24 = vadd.f32 %v3198_v21, %v3915_v10  ;;  %3401 = vset.pattern.permute.xlu0 %v3473_v17 }
 0x23c   : > { %v1507_v25 = vpop.f32.mrf.mxu1  ;;  %2186 = vperm.xlu0 %3401, %v2183_v16  }
 0x23d   : > { %v1508_v26 = vadd.f32 %v3915_v10, %v1507_v25  ;;  %3245 = vmatprep.mubr.msk.f32.mxu0 %vm909_vm1, %v1608_v22  ;;  %v1611_v29 = vmax.f32 %v1513_v24, 0.0 }
 0x23e   : > { %v3201_v27 = vpop.f32.mrf.mxu1  ;;  %3246 = vmatmul.mubr.msk.f32.gmra.mxu0 %vm909_vm1, %v1609_v23 }
 0x23f   : > { %v1610_v28 = vmax.f32 %v1508_v26, 0.0  ;;  %v1523_v30 = vadd.f32 %v3201_v27, %v3915_v10 }
 0x240   : > { %v1517_v31 = vpop.f32.mrf.mxu1 }
 0x241   : > { %v1518_v32 = vadd.f32 %v3915_v10, %v1517_v31  ;;  %3248 = vmatprep.mubr.msk.f32.mxu0 %vm909_vm1, %v1610_v28  ;;  %v1613_v34 = vmax.f32 %v1523_v30, 0.0  ;;  %v2117_v31 = vpop.permute.xlu0 %2116 }
 0x242   : > { %v3204_v33 = vpop.f32.mrf.mxu1  ;;  %3249 = vmatmul.mubr.msk.f32.gmra.mxu0 %vm909_vm1, %v1611_v29 }
 0x243   : > { %v1612_v3 = vmax.f32 %v1518_v32, 0.0  ;;  %v1533_v35 = vadd.f32 %v3204_v33, %v3915_v10 }
 0x244   : > { %v1527_v36 = vpop.f32.mrf.mxu1 }
 0x245   : > { %v1528_v37 = vadd.f32 %v3915_v10, %v1527_v36  ;;  %3251 = vmatprep.mubr.msk.f32.mxu0 %vm909_vm1, %v1612_v3  ;;  %v1615_v40 = vmax.f32 %v1533_v35, 0.0  ;;  %v2085_v3 = vpop.permute.xlu1 %2084  ;;  %v2115_v35 = vpop.permute.xlu0 %2114 }
 0x246   : > { %v3207_v38 = vpop.f32.mrf.mxu1  ;;  %3252 = vmatmul.mubr.msk.f32.gmra.mxu0 %vm909_vm1, %v1613_v34 }
 0x247   : > { %v1614_v39 = vmax.f32 %v1528_v37, 0.0  ;;  %v1543_v41 = vadd.f32 %v3207_v38, %v3915_v10 }
 0x248   : > { %v1537_v42 = vpop.f32.mrf.mxu1 }
 0x249   : > { %v1538_v43 = vadd.f32 %v3915_v10, %v1537_v42  ;;  %3254 = vmatprep.mubr.msk.f32.mxu0 %vm909_vm1, %v1614_v39  ;;  %v1617_v46 = vmax.f32 %v1543_v41, 0.0  ;;  %v2083_v38 = vpop.permute.xlu1 %2082 }
 0x24a   : > { %v3210_v44 = vpop.f32.mrf.mxu1  ;;  %3255 = vmatmul.mubr.msk.f32.gmra.mxu0 %vm909_vm1, %v1615_v40  ;;  %v2113_v40 = vpop.permute.xlu0 %2112 }
 0x24b   : > { %v1616_v45 = vmax.f32 %v1538_v43, 0.0  ;;  %v1553_v47 = vadd.f32 %v3210_v44, %v3915_v10 }
 0x24c   : > { %v1547_v48 = vpop.f32.mrf.mxu1 }
 0x24d   : > { %v1548_v49 = vadd.f32 %v3915_v10, %v1547_v48  ;;  %3257 = vmatprep.mubr.msk.f32.mxu0 %vm909_vm1, %v1616_v45  ;;  %v1619_v53 = vmax.f32 %v1553_v47, 0.0  ;;  %v2081_v43 = vpop.permute.xlu1 %2080 }
 0x24e   : > { %v3213_v50 = vpop.f32.mrf.mxu1  ;;  %3258 = vmatmul.mubr.msk.f32.gmra.mxu0 %vm909_vm1, %v1617_v46  ;;  %v2111_v45 = vpop.permute.xlu0 %2110 }
 0x24f   : > { %v1618_v52 = vmax.f32 %v1548_v49, 0.0  ;;  %v1563_v54 = vadd.f32 %v3213_v50, %v3915_v10 }
 0x250   : > { %v1557_v55 = vpop.f32.mrf.mxu1 }
 0x251   : > { %v1558_v56 = vadd.f32 %v3915_v10, %v1557_v55  ;;  %3260 = vmatprep.mubr.msk.f32.mxu0 %vm909_vm1, %v1618_v52  ;;  %v1621_v58 = vmax.f32 %v1563_v54, 0.0  ;;  %v2079_v48 = vpop.permute.xlu1 %2078  ;;  %v4033_v55 = vld [vmem:[%s4197_s9] ss:$0 sm:$0xff] }
 0x252   : > { %v3216_v51 = vpop.f32.mrf.mxu1  ;;  %3261 = vmatmul.mubr.msk.f32.gmra.mxu0 %vm909_vm1, %v1619_v53  ;;  %v2109_v50 = vpop.permute.xlu0 %2108 }
 0x253   : > { %v1620_v57 = vmax.f32 %v1558_v56, 0.0  ;;  %v1573_v59 = vadd.f32 %v3216_v51, %v3915_v10 }
 0x254   : > { %v1567_v60 = vpop.f32.mrf.mxu1 }
 0x255   : > { %v1568_v61 = vadd.f32 %v3915_v10, %v1567_v60  ;;  %3263 = vmatprep.mubr.msk.f32.mxu0 %vm909_vm1, %v1620_v57  ;;  %v1623_v0 = vmax.f32 %v1573_v59, 0.0  ;;  %v2077_v54 = vpop.permute.xlu1 %2076 }
 0x256   : > { %v3219_v62 = vpop.f32.mrf.mxu1  ;;  %3264 = vmatmul.mubr.msk.f32.gmra.mxu0 %vm909_vm1, %v1621_v58  ;;  %v2107_v57 = vpop.permute.xlu0 %2106 }
 0x257   : > { %v1622_v63 = vmax.f32 %v1568_v61, 0.0  ;;  %v1583_v1 = vadd.f32 %v3219_v62, %v3915_v10 }
 0x258   : > { %v1577_v2 = vpop.f32.mrf.mxu1 }
 0x259   : > { %v1578_v4 = vadd.f32 %v3915_v10, %v1577_v2  ;;  %3266 = vmatprep.mubr.msk.f32.mxu0 %vm909_vm1, %v1622_v63  ;;  %v1625_v7 = vmax.f32 %v1583_v1, 0.0  ;;  %v2075_v63 = vpop.permute.xlu1 %2074 }
 0x25a   : > { %v3222_v5 = vpop.f32.mrf.mxu1  ;;  %3267 = vmatmul.mubr.msk.f32.gmra.mxu0 %vm909_vm1, %v1623_v0 }
 0x25b   : > { %v1624_v6 = vmax.f32 %v1578_v4, 0.0  ;;  %v1593_v8 = vadd.f32 %v3222_v5, %v3915_v10 }
 0x25c   : > { %v1587_v9 = vpop.f32.mrf.mxu1 }
 0x25d   : > { %v1588_v11 = vadd.f32 %v3915_v10, %v1587_v9  ;;  %3269 = vmatprep.mubr.msk.f32.mxu0 %vm909_vm1, %v1624_v6  ;;  %v1627_v13 = vmax.f32 %v1593_v8, 0.0  ;;  %v2105_v6 = vpop.permute.xlu0 %2104  ;;  %v2073_v16 = vpop.permute.xlu1 %2072 }
 0x25e   : > { %3270 = vmatmul.mubr.msk.f32.gmra.mxu0 %vm909_vm1, %v1625_v7 }
 0x25f   : > { %v1626_v12 = vmax.f32 %v1588_v11, 0.0 }
 0x261   : > { %3272 = vmatprep.mubr.msk.f32.mxu0 %vm909_vm1, %v1626_v12 }
 0x262   : > { %3273 = vmatmul.mubr.msk.f32.gmra.mxu0 %vm909_vm1, %v1627_v13 }
 0x2e6   : > { %v3986_v15 = vpop.f32.mrf.mxu0 }
 0x2e8   : > { %v3990_v10 = vpop.f32.mrf.mxu0 }
 0x2ea   : > { %v3992_v18 = vpop.f32.mrf.mxu0 }
 0x2ec   : > { %v3994_v19 = vpop.f32.mrf.mxu0 }
 0x2ee   : > { %v3996_v20 = vpop.f32.mrf.mxu0 }
 0x2f0   : > { %v3998_v21 = vpop.f32.mrf.mxu0 }
 0x2f2   : > { %v4000_v22 = vpop.f32.mrf.mxu0 }
 0x2f4   : > { %v4002_v23 = vpop.f32.mrf.mxu0 }
 0x2f6   : > { %v4004_v24 = vpop.f32.mrf.mxu0 }
 0x2f8   : > { %v4006_v25 = vpop.f32.mrf.mxu0 }
 0x2fa   : > { %v4008_v26 = vpop.f32.mrf.mxu0 }
 0x2fc   : > { %v4010_v27 = vpop.f32.mrf.mxu0 }
 0x2fe   : > { %v3247_v28 = vpop.f32.mrf.mxu0 }
 0x2ff   : > { %v1865_v7 = vadd.f32 %v3247_v28, %v4033_v55 }
 0x300   : > { %v1859_v29 = vpop.f32.mrf.mxu0 }
 0x301   : > { %v1971_v17 = vmax.f32 %v1865_v7, 0.0 }
 0x302   : > { %v3250_v30 = vpop.f32.mrf.mxu0 }
 0x303   : > { %v1875_v56 = vadd.f32 %v3250_v30, %v4033_v55  ;;  %v1860_v30 = vadd.f32 %v4033_v55, %v1859_v29 }
 0x304   : > { %v1869_v32 = vpop.f32.mrf.mxu0 }
 0x305   : > { %v1973_v60 = vmax.f32 %v1875_v56, 0.0  ;;  %v1870_v61 = vadd.f32 %v4033_v55, %v1869_v32  ;;  %v2163_v56 = vsel %vm867_vm0, %v1971_v17, %v2081_v43 }
 0x306   : > { %v4012_v33 = vpop.f32.mrf.mxu0 }
 0x307   : > { %v2165_v8 = vsel %vm867_vm0, %v1973_v60, %v2085_v3  ;;  %v1972_v9 = vmax.f32 %v1870_v61, 0.0  ;;  %v1850_v60 = vadd.f32 %v4033_v55, %v4010_v27 }
 0x308   : > { %v4014_v34 = vpop.f32.mrf.mxu0 }
 0x309   : > { %v2164_v28 = vsel %vm867_vm0, %v1972_v9, %v2083_v38 }
 0x30a   : > { %v4016_v36 = vpop.f32.mrf.mxu0 }
 0x30c   : > { %v4018_v37 = vpop.f32.mrf.mxu0 }
 0x30e   : > { %v4020_v39 = vpop.f32.mrf.mxu0 }
 0x310   : > { %v4022_v41 = vpop.f32.mrf.mxu0 }
 0x312   : > { %v4024_v42 = vpop.f32.mrf.mxu0 }
 0x314   : > { %v4026_v44 = vpop.f32.mrf.mxu0 }
 0x316   : > { %v3265_v46 = vpop.f32.mrf.mxu0 }
 0x317   : > { %v1925_v43 = vadd.f32 %v3265_v46, %v4033_v55 }
 0x318   : > { %v4028_v47 = vpop.f32.mrf.mxu0 }
 0x319   : > { %v1920_v27 = vadd.f32 %v4033_v55, %v4028_v47 }
 0x31a   : > { %v3268_v49 = vpop.f32.mrf.mxu0 }
 0x31b   : > { %v1982_v7 = vmax.f32 %v1920_v27, 0.0 }
 0x31c   : > { %v1929_v52 = vpop.f32.mrf.mxu0 }
 0x31d   : > { %v1930_v38 = vadd.f32 %v4033_v55, %v1929_v52 }
 0x31e   : > { %v3271_v53 = vpop.f32.mrf.mxu0 }
 0x31f   : > { %v1945_v0 = vadd.f32 %v3271_v53, %v4033_v55  ;;  %v2103_v53 = vpop.permute.xlu0 %2102  ;;  %v1984_v61 = vmax.f32 %v1930_v38, 0.0 }
 0x320   : > { %v1939_v51 = vpop.f32.mrf.mxu0 }
 0x321   : > { %v1987_v11 = vmax.f32 %v1945_v0, 0.0  ;;  %v1940_v12 = vadd.f32 %v4033_v55, %v1939_v51  ;;  %v1970_v51 = vmax.f32 %v1860_v30, 0.0  ;;  %v2176_v46 = vsel %vm867_vm0, %v1984_v61, %v2107_v57 }
 0x322   : > { %v3274_v58 = vpop.f32.mrf.mxu0  ;;  %v1835_v57 = vadd.f32 %v4000_v22, %v4033_v55  ;;  %v1810_v61 = vadd.f32 %v4033_v55, %v3994_v19 }
 0x323   : > { %v1955_v59 = vadd.f32 %v3274_v58, %v4033_v55  ;;  %v1986_v32 = vmax.f32 %v1940_v12, 0.0  ;;  %v2179_v3 = vsel %vm867_vm0, %v1987_v11, %v2113_v40  ;;  %v2071_v58 = vpop.permute.xlu1 %2070  ;;  %v2101_v40 = vpop.permute.xlu0 %2100 }
 0x324   : > { %v1949_v62 = vpop.f32.mrf.mxu0  ;;  %v1965_v12 = vmax.f32 %v1835_v57, 0.0 }
 0x325   : > { %v1989_v1 = vmax.f32 %v1955_v59, 0.0  ;;  %v1950_v2 = vadd.f32 %v4033_v55, %v1949_v62 }
 0x327   : > { %v1988_v4 = vmax.f32 %v1950_v2, 0.0  ;;  %v2181_v5 = vsel %vm867_vm0, %v1989_v1, %v2117_v31  ;;  %v1935_v31 = vadd.f32 %v3268_v49, %v4033_v55  ;;  %v2178_v49 = vsel %vm867_vm0, %v1986_v32, %v2111_v45  ;;  %v2069_v62 = vpop.permute.xlu1 %2068 }
 0x328   : > { %3081 = vmatprep.subr.msk.mxu1 %vm909_vm1, %v2181_v5  ;;  %v1845_v45 = vadd.f32 %v4004_v24, %v4033_v55  ;;  %v1968_v1 = vmax.f32 %v1850_v60, 0.0  ;;  %v1983_v2 = vmax.f32 %v1925_v43, 0.0  ;;  %v1890_v60 = vadd.f32 %v4033_v55, %v4018_v37 }
 0x329   : > { %3082 = vmatpush3.xpose.msk.msra.mxu1 %vm909_vm1, %v2165_v8  ;;  %v2180_v13 = vsel %vm867_vm0, %v1988_v4, %v2115_v35  ;;  %v1855_v35 = vadd.f32 %v4008_v26, %v4033_v55  ;;  %v1985_v29 = vmax.f32 %v1935_v31, 0.0  ;;  %v2162_v26 = vsel %vm867_vm0, %v1970_v51, %v2079_v48  ;;  %v2099_v48 = vpop.permute.xlu0 %2098 }
 0x32a   : > { %3083 = vmatprep.subr.msk.mxu1 %vm909_vm1, %v2180_v13  ;;  %v1840_v4 = vadd.f32 %v4033_v55, %v4006_v25  ;;  %v2160_v24 = vsel %vm867_vm0, %v1968_v1, %v2075_v63  ;;  %v2175_v47 = vsel %vm867_vm0, %v1983_v2, %v2105_v6  ;;  %v1910_v63 = vadd.f32 %v4033_v55, %v4026_v44 }
 0x32b   : > { %v1969_v59 = vmax.f32 %v1855_v35, 0.0  ;;  %v2177_v52 = vsel %vm867_vm0, %v1985_v29, %v2109_v50  ;;  %v1967_v50 = vmax.f32 %v1845_v45, 0.0  ;;  %v2067_v5 = vpop.permute.xlu1 %2066  ;;  %v1830_v13 = vadd.f32 %v4033_v55, %v4002_v23 }
 0x32c   : > { %v1966_v25 = vmax.f32 %v1840_v4, 0.0  ;;  %v1980_v17 = vmax.f32 %v1910_v63, 0.0  ;;  %v2157_v31 = vsel %vm867_vm0, %v1965_v12, %v2069_v62  ;;  %v1885_v62 = vadd.f32 %v4012_v33, %v4033_v55 }
 0x32d   : > { %3084 = vmatpush3.xpose.msk.msra.mxu1 %vm909_vm1, %v2164_v28  ;;  %v2161_v0 = vsel %vm867_vm0, %v1969_v59, %v2077_v54  ;;  %v1915_v54 = vadd.f32 %v4024_v42, %v4033_v55  ;;  %v2159_v8 = vsel %vm867_vm0, %v1967_v50, %v2073_v16  ;;  %v2097_v9 = vpop.permute.xlu0 %2096  ;;  %v2174_v42 = vsel %vm867_vm0, %v1982_v7, %v2103_v53 }
 0x32e   : > { %3085 = vmatprep.subr.msk.mxu1 %vm909_vm1, %v2179_v3  ;;  %v2158_v22 = vsel %vm867_vm0, %v1966_v25, %v2071_v58  ;;  %v1905_v16 = vadd.f32 %v4020_v39, %v4033_v55  ;;  %v1825_v28 = vadd.f32 %v3996_v20, %v4033_v55  ;;  %v1964_v32 = vmax.f32 %v1830_v13, 0.0 }
 0x32f   : > { %v1981_v11 = vmax.f32 %v1915_v54, 0.0  ;;  %v2065_v6 = vpop.permute.xlu1 %2064  ;;  %v1900_v53 = vadd.f32 %v4033_v55, %v4022_v41  ;;  %v2172_v39 = vsel %vm867_vm0, %v1980_v17, %v2099_v48  ;;  %v1895_v58 = vadd.f32 %v4016_v36, %v4033_v55 }
 0x330   : > { %v1979_v3 = vmax.f32 %v1905_v16, 0.0  ;;  %v1963_v35 = vmax.f32 %v1825_v28, 0.0  ;;  %v2156_v20 = vsel %vm867_vm0, %v1964_v32, %v2067_v5  ;;  %v1976_v45 = vmax.f32 %v1890_v60, 0.0 }
 0x331   : > { %3086 = vmatpush3.xpose.msk.msra.mxu1 %vm909_vm1, %v2163_v56  ;;  %v2173_v44 = vsel %vm867_vm0, %v1981_v11, %v2101_v40  ;;  %v2095_v30 = vpop.permute.xlu0 %2094  ;;  %v1820_v56 = vadd.f32 %v4033_v55, %v3998_v21  ;;  %v1978_v29 = vmax.f32 %v1900_v53, 0.0  ;;  %v1977_v59 = vmax.f32 %v1895_v58, 0.0 }
 0x332   : > { %3087 = vmatprep.subr.msk.mxu1 %vm909_vm1, %v2178_v49  ;;  %v2171_v41 = vsel %vm867_vm0, %v1979_v3, %v2097_v9  ;;  %v1815_v49 = vadd.f32 %v3992_v18, %v4033_v55  ;;  %v2155_v40 = vsel %vm867_vm0, %v1963_v35, %v2065_v6  ;;  %v1960_v2 = vmax.f32 %v1810_v61, 0.0 }
 0x333   : > { %v2063_v23 = vpop.permute.xlu1 %2062  ;;  %v1962_v21 = vmax.f32 %v1820_v56, 0.0  ;;  %v2170_v36 = vsel %vm867_vm0, %v1978_v29, %v2095_v30  ;;  %v1975_v27 = vmax.f32 %v1885_v62, 0.0  ;;  %v1800_v4 = vadd.f32 %v4033_v55, %v3990_v10 }
 0x334   : > { %v1961_v43 = vmax.f32 %v1815_v49, 0.0 }
 0x335   : > { %3088 = vmatpush3.xpose.msk.msra.mxu1 %vm909_vm1, %v2162_v26  ;;  %v2093_v51 = vpop.permute.xlu0 %2092  ;;  %v2154_v18 = vsel %vm867_vm0, %v1962_v21, %v2063_v23  ;;  %v1958_v7 = vmax.f32 %v1800_v4, 0.0 }
 0x336   : > { %3089 = vmatprep.subr.msk.mxu1 %vm909_vm1, %v2177_v52  ;;  %v2169_v37 = vsel %vm867_vm0, %v1977_v59, %v2093_v51 }
 0x337   : > { %v2061_v38 = vpop.permute.xlu1 %2060 }
 0x338   : > { %v2153_v1 = vsel %vm867_vm0, %v1961_v43, %v2061_v38 }
 0x339   : > { %3090 = vmatpush3.xpose.msk.msra.mxu1 %vm909_vm1, %v2161_v0  ;;  %v2091_v26 = vpop.permute.xlu0 %2090  ;;  %v1805_v0 = vadd.f32 %v3986_v15, %v4033_v55 }
 0x33a   : > { %3091 = vmatprep.subr.msk.mxu1 %vm909_vm1, %v2176_v46  ;;  %v1880_v46 = vadd.f32 %v4033_v55, %v4014_v34  ;;  %v2168_v33 = vsel %vm867_vm0, %v1976_v45, %v2091_v26  ;;  %v2189_v55 = vlaneseq }
 0x33b   : > { %v2059_v52 = vpop.permute.xlu1 %2058  ;;  %v1959_v50 = vmax.f32 %v1805_v0, 0.0 }
 0x33c   : > { %v2152_v15 = vsel %vm867_vm0, %v1960_v2, %v2059_v52  ;;  %v1974_v5 = vmax.f32 %v1880_v46, 0.0  ;;  %vm2395_vm3 = vcmp.lt.s32.totalorder %v2189_v55, 256 }
 0x33d   : > { %3092 = vmatpush3.xpose.msk.msra.mxu1 %vm909_vm1, %v2160_v24  ;;  %v2089_v19 = vpop.permute.xlu0 %2088 }
 0x33e   : > { %3093 = vmatprep.subr.msk.mxu1 %vm909_vm1, %v2175_v47  ;;  %v2167_v24 = vsel %vm867_vm0, %v1975_v27, %v2089_v19 }
 0x33f   : > { %v2057_v48 = vpop.permute.xlu1 %2056 }
 0x340   : > { %v2151_v34 = vsel %vm867_vm0, %v1959_v50, %v2057_v48 }
 0x341   : > { %3094 = vmatpush3.xpose.msk.msra.mxu1 %vm909_vm1, %v2159_v8  ;;  %v2087_v54 = vpop.permute.xlu0 %2086  ;;  %v2190_v8 = vshrl.u32 %v2189_v55, 7 }
 0x342   : > { %3095 = vmatprep.subr.msk.mxu1 %vm909_vm1, %v2174_v42  ;;  %v2166_v57 = vsel %vm867_vm0, %v1974_v5, %v2087_v54 }
 0x343   : > { %v2055_v47 = vpop.permute.xlu1 %2054  ;;  %v2191_v9 = vsub.s32 0, %v2190_v8 }
 0x344   : > { %v2150_v10 = vsel %vm867_vm0, %v1958_v7, %v2055_v47 }
 0x345   : > { %3096 = vmatpush3.xpose.msk.msra.mxu1 %vm909_vm1, %v2158_v22  ;;  %v2187_v25 = vpop.permute.xlu0 %2186 }
 0x346   : > { %3097 = vmatprep.subr.msk.mxu1 %vm909_vm1, %v2173_v44  ;;  %v2192_v11 = vrot.slane %v2187_v25, %v2191_v9 }
 0x349   : > { %3098 = vmatpush3.xpose.msk.msra.mxu1 %vm909_vm1, %v2157_v31 }
 0x34a   : > { %3099 = vmatprep.subr.msk.mxu1 %vm909_vm1, %v2172_v39 }
 0x34d   : > { %3100 = vmatpush3.xpose.msk.msra.mxu1 %vm909_vm1, %v2156_v20 }
 0x34e   : > { %3101 = vmatprep.subr.msk.mxu1 %vm909_vm1, %v2171_v41 }
 0x351   : > { %3102 = vmatpush3.xpose.msk.msra.mxu1 %vm909_vm1, %v2155_v40 }
 0x352   : > { %3103 = vmatprep.subr.msk.mxu1 %vm909_vm1, %v2170_v36 }
 0x355   : > { %3104 = vmatpush3.xpose.msk.msra.mxu1 %vm909_vm1, %v2154_v18 }
 0x356   : > { %3105 = vmatprep.subr.msk.mxu1 %vm909_vm1, %v2169_v37 }
 0x359   : > { %3106 = vmatpush3.xpose.msk.msra.mxu1 %vm909_vm1, %v2153_v1 }
 0x35a   : > { %3107 = vmatprep.subr.msk.mxu1 %vm909_vm1, %v2168_v33 }
 0x35d   : > { %3108 = vmatpush3.xpose.msk.msra.mxu1 %vm909_vm1, %v2152_v15 }
 0x35e   : > { %3109 = vmatprep.subr.msk.mxu1 %vm909_vm1, %v2167_v24 }
 0x361   : > { %3110 = vmatpush3.xpose.msk.msra.mxu1 %vm909_vm1, %v2151_v34 }
 0x362   : > { %3111 = vmatprep.subr.msk.mxu1 %vm909_vm1, %v2166_v57 }
 0x365   : > { %3112 = vmatpush3.xpose.msk.msra.mxu1 %vm909_vm1, %v2150_v10 }
 0x368   : > { %3114 = vmatmul.mubr.msk.f32.vlgmr.msra.gmra.mxu1 %vm909_vm1, %v3984_v14  ;;  %v3474_v14 = vmov 1966171168  }
 0x369   : > { %v2379_v28 = vunpack.c.l.s4 %v3474_v14 }
 0x36b   : > { %v2380_v31 = vunpack.c.0.s8 %v2379_v28 }
 0x36d   : > { %v2383_v23 = vsub.s32 %v2380_v31, %v2190_v8 }
 0x428   : > { %v2358_v63 = vpop.f32.mrf.mxu1 }
 0x429   : > { %v2359_v42 = vadd.f32 %v2358_v63, %v2192_v11 }
 0x42a   : > { %v2360_v6 = vpop.f32.mrf.mxu1 }
 0x42b   : > { %v2653_v12 = vmul.f32 -1.442695, %v2359_v42  ;;  %v2361_v13 = vadd.f32 %v2360_v6, %v2192_v11 }
 0x42d   : > { %3402 = vpow2.f32 %v2653_v12  ;;  %v2654_v22 = vmul.f32 -1.442695, %v2361_v13 }
 0x42f   : > { %3404 = vpow2.f32 %v2654_v22 }
 0x43a   : > { %v3403_v16 = vpop.eup %3402 }
 0x43b   : > { %v2369_v17 = vadd.f32 1.0, %v3403_v16 }
 0x43c   : > { %v3405_v44 = vpop.eup %3404 }
 0x43d   : > { %v2370_v30 = vadd.f32 1.0, %v3405_v44  ;;  %3406 = vrcp.f32 %v2369_v17 }
 0x43f   : > { %3408 = vrcp.f32 %v2370_v30 }
 0x44a   : > { %v3407_v32 = vpop.eup %3406 }
 0x44c   : > { %v3409_v3 = vpop.eup %3408 }
 0x44d   : > { %v2377_v53 = vcombine.low %v3407_v32, %v3409_v3 }
 0x44f   : > { %v2384_v39 = vrot.slane %v2377_v53, %v2383_v23 }
 0x451   : > { %v2391_v35 = vrot.slane %v2384_v39, %v2383_v23 }
 0x453   : > { %2397 = vst.msk [vmem:[%s457_s11] sm:$0x3] %vm2395_vm3, %v2391_v35 }
 0x454   : > { %3423 = shalt.err (!%p3420_p3)
}
 0x455   : > { %s3424_s1 = scalar_lea.hbm %s2411_s30, 32  ;;  %s3428_s11 = scalar_lea.hbm %s4200_s12, 128 }
 0x456   : > { %p3425_p4 = scmp.ne.s32.totalorder %s2411_s30, %s3424_s1  ;;  %p3429_p9 = scmp.lt.s32.totalorder %s2411_s30, %s4200_s12 }
 0x457   : > { %p3430_p10 = scmp.lt.s32.totalorder %s3428_s11, %s3424_s1 }
 0x458   : > { %p3426_p7 = pnand %p3425_p4, %p3579_p5 }
 0x459   : > { %p3431_p11 = por %p3430_p10, %p3429_p9 }
 0x45a   : > { %p3427_p8 = pneg %p3426_p7 }
 0x45c   : > { %p3432_p12 = pnand %p3431_p11, %p3427_p8 }
 0x45e   : > { %3435 = shalt.err (!%p3432_p12)
}
 0x45f   : > { %3279 = dma.vmem_to_hbm [thread:$0]  (%p3579_p5), %s2414_s27, 32, %s2411_s30, %s2399_s17  }
 0x460 PF: > { %p3285_p13 = scmp.ge.s32.totalorder %s3470_s26, 2  ;;  %s2425_s0 = sand.u32 1, %s3458_s23  }
 0x461   : > { %s2426_s18 = scalar_lea.sflag [#allocation4], %s2425_s0 }
 0x462   : > { %p3282_p0 = pnand %p3285_p13, %p3583_p6 }
 0x464   : > { %p3283_p1 = pneg %p3282_p0 }
 0x466   : > { %3453 = dma.done.wait (%p3283_p1), %s2426_s18, 32  }
 0x467   : > { %3455 = vsyncadd (%p3283_p1), %s2426_s18, 4294967264  ;;  %p24_p2 = scmp.ge.s32.totalorder %s3567_s28, 6   ;;  %s4207_s23 = smov %s3462_s24 }
 0x468   : > { %s4208_s24 = smov %s3466_s25  ;;  %s4209_s25 = smov %s3577_s13 }
 0x469   : > { %s4210_s26 = smov %s3567_s28  ;;  %26 = sbr.rel (!%p24_p2) target bundleno = 6 (0x6), region = 112 }
 0x46e   :  { %2431 = vsyncpa [#allocation4], 1 }
 0x46f   :  { %2433 = vsyncpa [#allocation4 + $0x1], 1 }

</bundles_post_ra>
